<compile_context>
chip_gen: v7x
topology: tpu7x:2x2x1
jax: 0.10.0
libtpu: 0.0.40
codegen_flags: <defaults>
</compile_context>

<pallas_src>
import jax
import jax.numpy as jnp
from jax.experimental import pallas as pl
from jax.experimental.pallas import tpu as pltpu

# ---------------- config (mirrors the PyTorch module's __init__) ------------
VOCAB = 50
PAD_ID = 0
EMBED_DIM = 32                     # config.embed_dim (E)
HIDDEN_LSTM = EMBED_DIM // 2       # bilstm hidden per direction (H = 16)
HIDDEN_DIM = 64                    # config.hidden_dim
TAG_DIM = 8                        # config.tag_dim
OUT_PAD = 128                      # lane-padded width of the final linear
B = 8                              # batch (fills the 8 sublanes)
T = 8                              # sequence length

E = EMBED_DIM
H = HIDDEN_LSTM


# ----------------------------- Pallas kernel --------------------------------
def rcnn_kernel(tok_ref, emb_ref, wih_ref, whh_ref, b_ref,
                w_enc_ref, b_enc_ref, w_out_ref, b_out_ref,
                out_ref, xcat_ref):
    TB = T * B

    # ---- fused embedding lookup: one-hot matmul on the MXU (exact vs gather,
    #      padding row 0 of the table is all zeros) ----
    tok = tok_ref[...]                                            # (TB, 1) int32, t-major rows
    onehot = (jax.lax.broadcasted_iota(jnp.int32, (TB, VOCAB), 1) == tok
              ).astype(jnp.float32)                               # (TB, VOCAB)
    word = jnp.dot(onehot, emb_ref[...],
                   preferred_element_type=jnp.float32)            # (TB, E)

    # word occupies lanes [0, E) of the concat slab
    xcat_ref[:, 0:E] = word

    # ---- hoisted input projection for BOTH directions (one 128-lane matmul) --
    # column layout (interleaved by gate): [i_f i_b | f_f f_b | g_f g_b | o_f o_b]
    x_proj = (jnp.dot(word, wih_ref[...], preferred_element_type=jnp.float32)
              + b_ref[...])                                       # (TB, 8H) = (TB, 128)

    whh = whh_ref[...]                                            # (2H, 8H) block-diagonal

    # lanes belonging to the forward direction inside each 2H-wide gate block
    lane = jax.lax.broadcasted_iota(jnp.int32, (B, 8 * H), 1)
    fwd_lane = (lane % (2 * H)) < H

    h_cat = jnp.zeros((B, 2 * H), jnp.float32)                    # [h_f | h_b]
    c_cat = jnp.zeros((B, 2 * H), jnp.float32)                    # [c_f | c_b]

    # fused forward/backward recurrence: one MXU push per timestep
    for t in range(T):
        tb = T - 1 - t
        rec = jnp.dot(h_cat, whh, preferred_element_type=jnp.float32)   # (B, 128)
        xf = x_proj[t * B:(t + 1) * B, :]        # forward input proj @ time t
        xb = x_proj[tb * B:(tb + 1) * B, :]      # backward input proj @ time tb
        gates = rec + jnp.where(fwd_lane, xf, xb)                        # (B, 128)

        # full-width activations (EUP), slice AFTER activating
        sg = jax.nn.sigmoid(gates)
        th = jnp.tanh(gates)
        i_cat = sg[:, 0 * 2 * H:1 * 2 * H]
        f_cat = sg[:, 1 * 2 * H:2 * 2 * H]
        g_cat = th[:, 2 * 2 * H:3 * 2 * H]
        o_cat = sg[:, 3 * 2 * H:4 * 2 * H]

        c_cat = f_cat * c_cat + i_cat * g_cat
        h_cat = o_cat * jnp.tanh(c_cat)

        # write this step's hidden states straight into the concat slab
        xcat_ref[t * B:(t + 1) * B, E:E + H] = h_cat[:, 0:H]             # forward ctx
        xcat_ref[tb * B:(tb + 1) * B, E + H:2 * E] = h_cat[:, H:2 * H]   # backward ctx

    # ---- encoder(x).tanh() on the (TB, 2E) slab ----
    x2 = xcat_ref[...]
    enc = jnp.tanh(jnp.dot(x2, w_enc_ref[...], preferred_element_type=jnp.float32)
                   + b_enc_ref[...])                              # (TB, HIDDEN_DIM)

    # ---- max over the sequence (rows are t-major: r = t*B + b) ----
    pooled = enc[0:B, :]
    for t in range(1, T):
        pooled = jnp.maximum(pooled, enc[t * B:(t + 1) * B, :])   # (B, HIDDEN_DIM)

    # ---- final linear, padded to 128 lanes -> full-vreg unmasked store ----
    out_ref[...] = (jnp.dot(pooled, w_out_ref[...], preferred_element_type=jnp.float32)
                    + b_out_ref[...])                             # (B, OUT_PAD)


# ------------------------------- wrapper -------------------------------------
@jax.jit
def rcnn_forward(tokens, pk):
    # t-major flattened tokens: row r = t*B + b (matches the kernel's slab layout)
    tok_tb = tokens.T.reshape(T * B, 1).astype(jnp.int32)

    vmem = pl.BlockSpec(memory_space=pltpu.MemorySpace.VMEM)
    args = (tok_tb, pk["emb"], pk["wih"], pk["whh"], pk["b"],
            pk["w_enc"], pk["b_enc"], pk["w_out"], pk["b_out"])

    out_pad = pl.pallas_call(
        rcnn_kernel,
        out_shape=jax.ShapeDtypeStruct((B, OUT_PAD), jnp.float32),
        in_specs=[vmem] * len(args),
        out_specs=vmem,
        scratch_shapes=[pltpu.VMEM((T * B, 2 * E), jnp.float32)],   # [word | h_f | h_b] slab
    )(*args)
    return out_pad[:, :TAG_DIM]


# ----------------------- parameter packing (done once) -----------------------
def pack_params(p):
    """Pack per-direction LSTM weights into MXU-friendly 128-lane slabs."""
    def interleave(a_f, a_b, rows):
        # columns -> [i_f i_b | f_f f_b | g_f g_b | o_f o_b], each block H wide
        return jnp.concatenate(
            [a_f.reshape(rows, 4, 1, H), a_b.reshape(rows, 4, 1, H)], axis=2
        ).reshape(rows, 8 * H)

    wih = interleave(p["wih_f"], p["wih_b"], E)                   # (E, 8H)
    b = interleave(p["b_f"], p["b_b"], 1)                         # (1, 8H)

    zf = jnp.zeros((H, 4, 1, H), jnp.float32)
    top = jnp.concatenate([p["whh_f"].reshape(H, 4, 1, H), zf], axis=2).reshape(H, 8 * H)
    bot = jnp.concatenate([zf, p["whh_b"].reshape(H, 4, 1, H)], axis=2).reshape(H, 8 * H)
    whh = jnp.concatenate([top, bot], axis=0)                     # (2H, 8H) block-diagonal

    w_out = jnp.zeros((HIDDEN_DIM, OUT_PAD), jnp.float32).at[:, :TAG_DIM].set(p["w_out"])
    b_out = jnp.zeros((1, OUT_PAD), jnp.float32).at[:, :TAG_DIM].set(p["b_out"])

    return dict(emb=p["emb"], wih=wih, whh=whh, b=b,
                w_enc=p["w_enc"], b_enc=p["b_enc"], w_out=w_out, b_out=b_out)


# ----------------------- pure-JAX reference (sanity) -------------------------
def rcnn_reference(tokens, p):
    hi = jax.lax.Precision.HIGHEST
    word = jnp.take(p["emb"], tokens, axis=0).astype(jnp.float32)   # (B, T, E)

    def cell(x_t, h, c, wih, whh, b):
        g = (jnp.dot(x_t, wih, precision=hi) + jnp.dot(h, whh, precision=hi) + b)
        i, f, gg, o = (jax.nn.sigmoid(g[:, :H]), jax.nn.sigmoid(g[:, H:2 * H]),
                       jnp.tanh(g[:, 2 * H:3 * H]), jax.nn.sigmoid(g[:, 3 * H:]))
        c = f * c + i * gg
        return o * jnp.tanh(c), c

    h = c = jnp.zeros((B, H), jnp.float32)
    fwd = []
    for t in range(T):
        h, c = cell(word[:, t, :], h, c, p["wih_f"], p["whh_f"], p["b_f"])
        fwd.append(h)
    h = c = jnp.zeros((B, H), jnp.float32)
    bwd = [None] * T
    for t in range(T - 1, -1, -1):
        h, c = cell(word[:, t, :], h, c, p["wih_b"], p["whh_b"], p["b_b"])
        bwd[t] = h
    ctx = jnp.stack([jnp.concatenate([fwd[t], bwd[t]], -1) for t in range(T)], 1)
    x = jnp.concatenate([word, ctx], -1).reshape(B * T, 2 * E)
    x = jnp.tanh(jnp.dot(x, p["w_enc"], precision=hi) + p["b_enc"]).reshape(B, T, HIDDEN_DIM)
    x = jnp.max(x, axis=1)
    return jnp.dot(x, p["w_out"], precision=hi) + p["b_out"]


# --------------------------- parameter init ----------------------------------
def init_params(key):
    ks = jax.random.split(key, 16)

    def u(k, shape, scale):
        return jax.random.uniform(k, shape, jnp.float32, -scale, scale)

    emb = jax.random.normal(ks[0], (VOCAB, E), jnp.float32)
    emb = emb.at[PAD_ID].set(0.0)                       # padding_idx row = 0

    s = 1.0 / (H ** 0.5)
    # stored transposed relative to PyTorch: (in_features, 4H), gate order i,f,g,o
    wih_f = u(ks[1], (E, 4 * H), s)
    whh_f = u(ks[2], (H, 4 * H), s)
    b_f = u(ks[3], (1, 4 * H), s) + u(ks[4], (1, 4 * H), s)   # b_ih + b_hh
    wih_b = u(ks[5], (E, 4 * H), s)
    whh_b = u(ks[6], (H, 4 * H), s)
    b_b = u(ks[7], (1, 4 * H), s) + u(ks[8], (1, 4 * H), s)

    se = 1.0 / ((2 * E) ** 0.5)
    w_enc = u(ks[9], (2 * E, HIDDEN_DIM), se)
    b_enc = u(ks[10], (1, HIDDEN_DIM), se)

    so = 1.0 / (HIDDEN_DIM ** 0.5)
    w_out = u(ks[11], (HIDDEN_DIM, TAG_DIM), so)
    b_out = u(ks[12], (1, TAG_DIM), so)

    return dict(emb=emb, wih_f=wih_f, whh_f=whh_f, b_f=b_f,
                wih_b=wih_b, whh_b=whh_b, b_b=b_b,
                w_enc=w_enc, b_enc=b_enc, w_out=w_out, b_out=b_out)


if __name__ == "__main__":
    key = jax.random.PRNGKey(0)
    pkey, tkey = jax.random.split(key)
    params = init_params(pkey)
    packed = pack_params(params)
    tokens = jax.random.randint(tkey, (B, T), 0, VOCAB, dtype=jnp.int32)

    out = jax.block_until_ready(rcnn_forward(tokens, packed))
    ref = rcnn_reference(tokens, params)

    assert out.shape == (B, TAG_DIM)
    assert jnp.allclose(out, ref, atol=1e-4, rtol=1e-4), "mismatch vs reference"
    print("KERNEL_OK")
</pallas_src>

<mosaic_0001>
module attributes {stable_mosaic.version = 11 : i64} {
  func.func @rcnn_kernel(%arg0: memref<64x1xi32, #tpu.memory_space<vmem>>, %arg1: memref<50x32xf32, #tpu.memory_space<vmem>>, %arg2: memref<32x128xf32, #tpu.memory_space<vmem>>, %arg3: memref<32x128xf32, #tpu.memory_space<vmem>>, %arg4: memref<1x128xf32, #tpu.memory_space<vmem>>, %arg5: memref<64x64xf32, #tpu.memory_space<vmem>>, %arg6: memref<1x64xf32, #tpu.memory_space<vmem>>, %arg7: memref<64x128xf32, #tpu.memory_space<vmem>>, %arg8: memref<1x128xf32, #tpu.memory_space<vmem>>, %arg9: memref<8x128xf32, #tpu.memory_space<vmem>>, %arg10: memref<64x64xf32, #tpu.memory_space<vmem>>) attributes {dimension_semantics = [], scalar_prefetch = 0 : i64, scratch_operands = 1 : i64, tpu.core_type = #tpu.core_type<tc>} {
    %c0 = arith.constant 0 : index
    %c0_0 = arith.constant 0 : index
    %0 = vector.load %arg0[%c0, %c0_0] : memref<64x1xi32, #tpu.memory_space<vmem>>, vector<64x1xi32>
    %1 = tpu.iota {dimensions = array<i32: 1>} : vector<64x50xi32>
    %2 = vector.broadcast %0 : vector<64x1xi32> to vector<64x50xi32>
    %3 = arith.cmpi eq, %1, %2 : vector<64x50xi32>
    %4 = arith.extui %3 : vector<64x50xi1> to vector<64x50xi32>
    %5 = arith.sitofp %4 : vector<64x50xi32> to vector<64x50xf32>
    %c0_1 = arith.constant 0 : index
    %c0_2 = arith.constant 0 : index
    %6 = vector.load %arg1[%c0_1, %c0_2] : memref<50x32xf32, #tpu.memory_space<vmem>>, vector<50x32xf32>
    %cst = arith.constant dense<0.000000e+00> : vector<64x32xf32>
    %7 = tpu.matmul %5, %6, %cst {dimension_numbers = #tpu.dot_dimension_numbers<[1], [0], [0], [1], [0, 0, 1, 1], [], []>} : vector<64x50xf32>, vector<50x32xf32>, vector<64x32xf32> -> vector<64x32xf32>
    %c0_3 = arith.constant 0 : index
    %c0_4 = arith.constant 0 : index
    %8 = vector.load %arg10[%c0_3, %c0_4] : memref<64x64xf32, #tpu.memory_space<vmem>>, vector<64x32xf32>
    tpu.vector_store %arg10[%c0_3, %c0_4], %7 {strides = array<i32>} : memref<64x64xf32, #tpu.memory_space<vmem>>, vector<64x32xf32>,
    %c0_5 = arith.constant 0 : index
    %c0_6 = arith.constant 0 : index
    %9 = vector.load %arg2[%c0_5, %c0_6] : memref<32x128xf32, #tpu.memory_space<vmem>>, vector<32x128xf32>
    %cst_7 = arith.constant dense<0.000000e+00> : vector<64x128xf32>
    %10 = tpu.matmul %7, %9, %cst_7 {dimension_numbers = #tpu.dot_dimension_numbers<[1], [0], [0], [1], [0, 0, 1, 1], [], []>} : vector<64x32xf32>, vector<32x128xf32>, vector<64x128xf32> -> vector<64x128xf32>
    %c0_8 = arith.constant 0 : index
    %c0_9 = arith.constant 0 : index
    %11 = vector.load %arg4[%c0_8, %c0_9] : memref<1x128xf32, #tpu.memory_space<vmem>>, vector<1x128xf32>
    %12 = vector.broadcast %11 : vector<1x128xf32> to vector<64x128xf32>
    %13 = arith.addf %10, %12 : vector<64x128xf32>
    %c0_10 = arith.constant 0 : index
    %c0_11 = arith.constant 0 : index
    %14 = vector.load %arg3[%c0_10, %c0_11] : memref<32x128xf32, #tpu.memory_space<vmem>>, vector<32x128xf32>
    %15 = tpu.iota {dimensions = array<i32: 1>} : vector<8x128xi32>
    %c32_i32 = arith.constant 32 : i32
    %c0_i32 = arith.constant 0 : i32
    %16 = arith.cmpi eq, %c32_i32, %c0_i32 : i32
    %c1_i32 = arith.constant 1 : i32
    %17 = arith.select %16, %c1_i32, %c32_i32 : i32
    %18 = vector.broadcast %17 : i32 to vector<8x128xi32>
    %19 = arith.remsi %15, %18 : vector<8x128xi32>
    %c0_i32_12 = arith.constant 0 : i32
    %20 = vector.broadcast %c0_i32_12 : i32 to vector<8x128xi32>
    %21 = arith.cmpi ne, %19, %20 : vector<8x128xi32>
    %c0_i32_13 = arith.constant 0 : i32
    %22 = vector.broadcast %c0_i32_13 : i32 to vector<8x128xi32>
    %23 = arith.cmpi slt, %19, %22 : vector<8x128xi32>
    %c0_i32_14 = arith.constant 0 : i32
    %24 = arith.cmpi slt, %17, %c0_i32_14 : i32
    %25 = vector.broadcast %24 : i1 to vector<8x128xi1>
    %26 = vector.broadcast %25 : vector<8x128xi1> to vector<8x128xi1>
    %27 = arith.xori %23, %26 : vector<8x128xi1>
    %28 = arith.andi %27, %21 : vector<8x128xi1>
    %29 = vector.broadcast %17 : i32 to vector<8x128xi32>
    %30 = arith.addi %19, %29 : vector<8x128xi32>
    %31 = arith.select %28, %30, %19 : vector<8x128xi1>, vector<8x128xi32>
    %c16_i32 = arith.constant 16 : i32
    %32 = vector.broadcast %c16_i32 : i32 to vector<8x128xi32>
    %33 = arith.cmpi slt, %31, %32 : vector<8x128xi32>
    %cst_15 = arith.constant 0.000000e+00 : f32
    %34 = vector.broadcast %cst_15 : f32 to vector<8x32xf32>
    %cst_16 = arith.constant 0.000000e+00 : f32
    %35 = vector.broadcast %cst_16 : f32 to vector<8x32xf32>
    %cst_17 = arith.constant dense<0.000000e+00> : vector<8x128xf32>
    %36 = tpu.matmul %34, %14, %cst_17 {dimension_numbers = #tpu.dot_dimension_numbers<[1], [0], [0], [1], [0, 0, 1, 1], [], []>} : vector<8x32xf32>, vector<32x128xf32>, vector<8x128xf32> -> vector<8x128xf32>
    %37 = vector.extract_strided_slice %13 {offsets = [0, 0], sizes = [8, 128], strides = [1, 1]} : vector<64x128xf32> to vector<8x128xf32>
    %38 = vector.extract_strided_slice %13 {offsets = [56, 0], sizes = [8, 128], strides = [1, 1]} : vector<64x128xf32> to vector<8x128xf32>
    %39 = arith.select %33, %37, %38 : vector<8x128xi1>, vector<8x128xf32>
    %40 = arith.addf %36, %39 : vector<8x128xf32>
    %41 = arith.negf %40 : vector<8x128xf32>
    %42 = math.exp %41 : vector<8x128xf32>
    %cst_18 = arith.constant 1.000000e+00 : f32
    %43 = vector.broadcast %cst_18 : f32 to vector<8x128xf32>
    %44 = arith.addf %43, %42 : vector<8x128xf32>
    %45 = arith.divf %43, %44 : vector<8x128xf32>
    %46 = math.tanh %40 : vector<8x128xf32>
    %47 = vector.extract_strided_slice %45 {offsets = [0, 0], sizes = [8, 32], strides = [1, 1]} : vector<8x128xf32> to vector<8x32xf32>
    %48 = vector.extract_strided_slice %45 {offsets = [0, 32], sizes = [8, 32], strides = [1, 1]} : vector<8x128xf32> to vector<8x32xf32>
    %49 = vector.extract_strided_slice %46 {offsets = [0, 64], sizes = [8, 32], strides = [1, 1]} : vector<8x128xf32> to vector<8x32xf32>
    %50 = vector.extract_strided_slice %45 {offsets = [0, 96], sizes = [8, 32], strides = [1, 1]} : vector<8x128xf32> to vector<8x32xf32>
    %51 = arith.mulf %48, %35 : vector<8x32xf32>
    %52 = arith.mulf %47, %49 : vector<8x32xf32>
    %53 = arith.addf %51, %52 : vector<8x32xf32>
    %54 = math.tanh %53 : vector<8x32xf32>
    %55 = arith.mulf %50, %54 : vector<8x32xf32>
    %56 = vector.extract_strided_slice %55 {offsets = [0, 0], sizes = [8, 16], strides = [1, 1]} : vector<8x32xf32> to vector<8x16xf32>
    %c0_19 = arith.constant 0 : index
    %c32 = arith.constant 32 : index
    %57 = vector.load %arg10[%c0_19, %c32] : memref<64x64xf32, #tpu.memory_space<vmem>>, vector<8x16xf32>
    tpu.vector_store %arg10[%c0_19, %c32], %56 {strides = array<i32>} : memref<64x64xf32, #tpu.memory_space<vmem>>, vector<8x16xf32>,
    %58 = vector.extract_strided_slice %55 {offsets = [0, 16], sizes = [8, 16], strides = [1, 1]} : vector<8x32xf32> to vector<8x16xf32>
    %c56 = arith.constant 56 : index
    %c48 = arith.constant 48 : index
    %59 = vector.load %arg10[%c56, %c48] : memref<64x64xf32, #tpu.memory_space<vmem>>, vector<8x16xf32>
    tpu.vector_store %arg10[%c56, %c48], %58 {strides = array<i32>} : memref<64x64xf32, #tpu.memory_space<vmem>>, vector<8x16xf32>,
    %cst_20 = arith.constant dense<0.000000e+00> : vector<8x128xf32>
    %60 = tpu.matmul %55, %14, %cst_20 {dimension_numbers = #tpu.dot_dimension_numbers<[1], [0], [0], [1], [0, 0, 1, 1], [], []>} : vector<8x32xf32>, vector<32x128xf32>, vector<8x128xf32> -> vector<8x128xf32>
    %61 = vector.extract_strided_slice %13 {offsets = [8, 0], sizes = [8, 128], strides = [1, 1]} : vector<64x128xf32> to vector<8x128xf32>
    %62 = vector.extract_strided_slice %13 {offsets = [48, 0], sizes = [8, 128], strides = [1, 1]} : vector<64x128xf32> to vector<8x128xf32>
    %63 = arith.select %33, %61, %62 : vector<8x128xi1>, vector<8x128xf32>
    %64 = arith.addf %60, %63 : vector<8x128xf32>
    %65 = arith.negf %64 : vector<8x128xf32>
    %66 = math.exp %65 : vector<8x128xf32>
    %cst_21 = arith.constant 1.000000e+00 : f32
    %67 = vector.broadcast %cst_21 : f32 to vector<8x128xf32>
    %68 = arith.addf %67, %66 : vector<8x128xf32>
    %69 = arith.divf %67, %68 : vector<8x128xf32>
    %70 = math.tanh %64 : vector<8x128xf32>
    %71 = vector.extract_strided_slice %69 {offsets = [0, 0], sizes = [8, 32], strides = [1, 1]} : vector<8x128xf32> to vector<8x32xf32>
    %72 = vector.extract_strided_slice %69 {offsets = [0, 32], sizes = [8, 32], strides = [1, 1]} : vector<8x128xf32> to vector<8x32xf32>
    %73 = vector.extract_strided_slice %70 {offsets = [0, 64], sizes = [8, 32], strides = [1, 1]} : vector<8x128xf32> to vector<8x32xf32>
    %74 = vector.extract_strided_slice %69 {offsets = [0, 96], sizes = [8, 32], strides = [1, 1]} : vector<8x128xf32> to vector<8x32xf32>
    %75 = arith.mulf %72, %53 : vector<8x32xf32>
    %76 = arith.mulf %71, %73 : vector<8x32xf32>
    %77 = arith.addf %75, %76 : vector<8x32xf32>
    %78 = math.tanh %77 : vector<8x32xf32>
    %79 = arith.mulf %74, %78 : vector<8x32xf32>
    %80 = vector.extract_strided_slice %79 {offsets = [0, 0], sizes = [8, 16], strides = [1, 1]} : vector<8x32xf32> to vector<8x16xf32>
    %c8 = arith.constant 8 : index
    %c32_22 = arith.constant 32 : index
    %81 = vector.load %arg10[%c8, %c32_22] : memref<64x64xf32, #tpu.memory_space<vmem>>, vector<8x16xf32>
    tpu.vector_store %arg10[%c8, %c32_22], %80 {strides = array<i32>} : memref<64x64xf32, #tpu.memory_space<vmem>>, vector<8x16xf32>,
    %82 = vector.extract_strided_slice %79 {offsets = [0, 16], sizes = [8, 16], strides = [1, 1]} : vector<8x32xf32> to vector<8x16xf32>
    %c48_23 = arith.constant 48 : index
    %c48_24 = arith.constant 48 : index
    %83 = vector.load %arg10[%c48_23, %c48_24] : memref<64x64xf32, #tpu.memory_space<vmem>>, vector<8x16xf32>
    tpu.vector_store %arg10[%c48_23, %c48_24], %82 {strides = array<i32>} : memref<64x64xf32, #tpu.memory_space<vmem>>, vector<8x16xf32>,
    %cst_25 = arith.constant dense<0.000000e+00> : vector<8x128xf32>
    %84 = tpu.matmul %79, %14, %cst_25 {dimension_numbers = #tpu.dot_dimension_numbers<[1], [0], [0], [1], [0, 0, 1, 1], [], []>} : vector<8x32xf32>, vector<32x128xf32>, vector<8x128xf32> -> vector<8x128xf32>
    %85 = vector.extract_strided_slice %13 {offsets = [16, 0], sizes = [8, 128], strides = [1, 1]} : vector<64x128xf32> to vector<8x128xf32>
    %86 = vector.extract_strided_slice %13 {offsets = [40, 0], sizes = [8, 128], strides = [1, 1]} : vector<64x128xf32> to vector<8x128xf32>
    %87 = arith.select %33, %85, %86 : vector<8x128xi1>, vector<8x128xf32>
    %88 = arith.addf %84, %87 : vector<8x128xf32>
    %89 = arith.negf %88 : vector<8x128xf32>
    %90 = math.exp %89 : vector<8x128xf32>
    %cst_26 = arith.constant 1.000000e+00 : f32
    %91 = vector.broadcast %cst_26 : f32 to vector<8x128xf32>
    %92 = arith.addf %91, %90 : vector<8x128xf32>
    %93 = arith.divf %91, %92 : vector<8x128xf32>
    %94 = math.tanh %88 : vector<8x128xf32>
    %95 = vector.extract_strided_slice %93 {offsets = [0, 0], sizes = [8, 32], strides = [1, 1]} : vector<8x128xf32> to vector<8x32xf32>
    %96 = vector.extract_strided_slice %93 {offsets = [0, 32], sizes = [8, 32], strides = [1, 1]} : vector<8x128xf32> to vector<8x32xf32>
    %97 = vector.extract_strided_slice %94 {offsets = [0, 64], sizes = [8, 32], strides = [1, 1]} : vector<8x128xf32> to vector<8x32xf32>
    %98 = vector.extract_strided_slice %93 {offsets = [0, 96], sizes = [8, 32], strides = [1, 1]} : vector<8x128xf32> to vector<8x32xf32>
    %99 = arith.mulf %96, %77 : vector<8x32xf32>
    %100 = arith.mulf %95, %97 : vector<8x32xf32>
    %101 = arith.addf %99, %100 : vector<8x32xf32>
    %102 = math.tanh %101 : vector<8x32xf32>
    %103 = arith.mulf %98, %102 : vector<8x32xf32>
    %104 = vector.extract_strided_slice %103 {offsets = [0, 0], sizes = [8, 16], strides = [1, 1]} : vector<8x32xf32> to vector<8x16xf32>
    %c16 = arith.constant 16 : index
    %c32_27 = arith.constant 32 : index
    %105 = vector.load %arg10[%c16, %c32_27] : memref<64x64xf32, #tpu.memory_space<vmem>>, vector<8x16xf32>
    tpu.vector_store %arg10[%c16, %c32_27], %104 {strides = array<i32>} : memref<64x64xf32, #tpu.memory_space<vmem>>, vector<8x16xf32>,
    %106 = vector.extract_strided_slice %103 {offsets = [0, 16], sizes = [8, 16], strides = [1, 1]} : vector<8x32xf32> to vector<8x16xf32>
    %c40 = arith.constant 40 : index
    %c48_28 = arith.constant 48 : index
    %107 = vector.load %arg10[%c40, %c48_28] : memref<64x64xf32, #tpu.memory_space<vmem>>, vector<8x16xf32>
    tpu.vector_store %arg10[%c40, %c48_28], %106 {strides = array<i32>} : memref<64x64xf32, #tpu.memory_space<vmem>>, vector<8x16xf32>,
    %cst_29 = arith.constant dense<0.000000e+00> : vector<8x128xf32>
    %108 = tpu.matmul %103, %14, %cst_29 {dimension_numbers = #tpu.dot_dimension_numbers<[1], [0], [0], [1], [0, 0, 1, 1], [], []>} : vector<8x32xf32>, vector<32x128xf32>, vector<8x128xf32> -> vector<8x128xf32>
    %109 = vector.extract_strided_slice %13 {offsets = [24, 0], sizes = [8, 128], strides = [1, 1]} : vector<64x128xf32> to vector<8x128xf32>
    %110 = vector.extract_strided_slice %13 {offsets = [32, 0], sizes = [8, 128], strides = [1, 1]} : vector<64x128xf32> to vector<8x128xf32>
    %111 = arith.select %33, %109, %110 : vector<8x128xi1>, vector<8x128xf32>
    %112 = arith.addf %108, %111 : vector<8x128xf32>
    %113 = arith.negf %112 : vector<8x128xf32>
    %114 = math.exp %113 : vector<8x128xf32>
    %cst_30 = arith.constant 1.000000e+00 : f32
    %115 = vector.broadcast %cst_30 : f32 to vector<8x128xf32>
    %116 = arith.addf %115, %114 : vector<8x128xf32>
    %117 = arith.divf %115, %116 : vector<8x128xf32>
    %118 = math.tanh %112 : vector<8x128xf32>
    %119 = vector.extract_strided_slice %117 {offsets = [0, 0], sizes = [8, 32], strides = [1, 1]} : vector<8x128xf32> to vector<8x32xf32>
    %120 = vector.extract_strided_slice %117 {offsets = [0, 32], sizes = [8, 32], strides = [1, 1]} : vector<8x128xf32> to vector<8x32xf32>
    %121 = vector.extract_strided_slice %118 {offsets = [0, 64], sizes = [8, 32], strides = [1, 1]} : vector<8x128xf32> to vector<8x32xf32>
    %122 = vector.extract_strided_slice %117 {offsets = [0, 96], sizes = [8, 32], strides = [1, 1]} : vector<8x128xf32> to vector<8x32xf32>
    %123 = arith.mulf %120, %101 : vector<8x32xf32>
    %124 = arith.mulf %119, %121 : vector<8x32xf32>
    %125 = arith.addf %123, %124 : vector<8x32xf32>
    %126 = math.tanh %125 : vector<8x32xf32>
    %127 = arith.mulf %122, %126 : vector<8x32xf32>
    %128 = vector.extract_strided_slice %127 {offsets = [0, 0], sizes = [8, 16], strides = [1, 1]} : vector<8x32xf32> to vector<8x16xf32>
    %c24 = arith.constant 24 : index
    %c32_31 = arith.constant 32 : index
    %129 = vector.load %arg10[%c24, %c32_31] : memref<64x64xf32, #tpu.memory_space<vmem>>, vector<8x16xf32>
    tpu.vector_store %arg10[%c24, %c32_31], %128 {strides = array<i32>} : memref<64x64xf32, #tpu.memory_space<vmem>>, vector<8x16xf32>,
    %130 = vector.extract_strided_slice %127 {offsets = [0, 16], sizes = [8, 16], strides = [1, 1]} : vector<8x32xf32> to vector<8x16xf32>
    %c32_32 = arith.constant 32 : index
    %c48_33 = arith.constant 48 : index
    %131 = vector.load %arg10[%c32_32, %c48_33] : memref<64x64xf32, #tpu.memory_space<vmem>>, vector<8x16xf32>
    tpu.vector_store %arg10[%c32_32, %c48_33], %130 {strides = array<i32>} : memref<64x64xf32, #tpu.memory_space<vmem>>, vector<8x16xf32>,
    %cst_34 = arith.constant dense<0.000000e+00> : vector<8x128xf32>
    %132 = tpu.matmul %127, %14, %cst_34 {dimension_numbers = #tpu.dot_dimension_numbers<[1], [0], [0], [1], [0, 0, 1, 1], [], []>} : vector<8x32xf32>, vector<32x128xf32>, vector<8x128xf32> -> vector<8x128xf32>
    %133 = vector.extract_strided_slice %13 {offsets = [32, 0], sizes = [8, 128], strides = [1, 1]} : vector<64x128xf32> to vector<8x128xf32>
    %134 = vector.extract_strided_slice %13 {offsets = [24, 0], sizes = [8, 128], strides = [1, 1]} : vector<64x128xf32> to vector<8x128xf32>
    %135 = arith.select %33, %133, %134 : vector<8x128xi1>, vector<8x128xf32>
    %136 = arith.addf %132, %135 : vector<8x128xf32>
    %137 = arith.negf %136 : vector<8x128xf32>
    %138 = math.exp %137 : vector<8x128xf32>
    %cst_35 = arith.constant 1.000000e+00 : f32
    %139 = vector.broadcast %cst_35 : f32 to vector<8x128xf32>
    %140 = arith.addf %139, %138 : vector<8x128xf32>
    %141 = arith.divf %139, %140 : vector<8x128xf32>
    %142 = math.tanh %136 : vector<8x128xf32>
    %143 = vector.extract_strided_slice %141 {offsets = [0, 0], sizes = [8, 32], strides = [1, 1]} : vector<8x128xf32> to vector<8x32xf32>
    %144 = vector.extract_strided_slice %141 {offsets = [0, 32], sizes = [8, 32], strides = [1, 1]} : vector<8x128xf32> to vector<8x32xf32>
    %145 = vector.extract_strided_slice %142 {offsets = [0, 64], sizes = [8, 32], strides = [1, 1]} : vector<8x128xf32> to vector<8x32xf32>
    %146 = vector.extract_strided_slice %141 {offsets = [0, 96], sizes = [8, 32], strides = [1, 1]} : vector<8x128xf32> to vector<8x32xf32>
    %147 = arith.mulf %144, %125 : vector<8x32xf32>
    %148 = arith.mulf %143, %145 : vector<8x32xf32>
    %149 = arith.addf %147, %148 : vector<8x32xf32>
    %150 = math.tanh %149 : vector<8x32xf32>
    %151 = arith.mulf %146, %150 : vector<8x32xf32>
    %152 = vector.extract_strided_slice %151 {offsets = [0, 0], sizes = [8, 16], strides = [1, 1]} : vector<8x32xf32> to vector<8x16xf32>
    %c32_36 = arith.constant 32 : index
    %c32_37 = arith.constant 32 : index
    %153 = vector.load %arg10[%c32_36, %c32_37] : memref<64x64xf32, #tpu.memory_space<vmem>>, vector<8x16xf32>
    tpu.vector_store %arg10[%c32_36, %c32_37], %152 {strides = array<i32>} : memref<64x64xf32, #tpu.memory_space<vmem>>, vector<8x16xf32>,
    %154 = vector.extract_strided_slice %151 {offsets = [0, 16], sizes = [8, 16], strides = [1, 1]} : vector<8x32xf32> to vector<8x16xf32>
    %c24_38 = arith.constant 24 : index
    %c48_39 = arith.constant 48 : index
    %155 = vector.load %arg10[%c24_38, %c48_39] : memref<64x64xf32, #tpu.memory_space<vmem>>, vector<8x16xf32>
    tpu.vector_store %arg10[%c24_38, %c48_39], %154 {strides = array<i32>} : memref<64x64xf32, #tpu.memory_space<vmem>>, vector<8x16xf32>,
    %cst_40 = arith.constant dense<0.000000e+00> : vector<8x128xf32>
    %156 = tpu.matmul %151, %14, %cst_40 {dimension_numbers = #tpu.dot_dimension_numbers<[1], [0], [0], [1], [0, 0, 1, 1], [], []>} : vector<8x32xf32>, vector<32x128xf32>, vector<8x128xf32> -> vector<8x128xf32>
    %157 = vector.extract_strided_slice %13 {offsets = [40, 0], sizes = [8, 128], strides = [1, 1]} : vector<64x128xf32> to vector<8x128xf32>
    %158 = vector.extract_strided_slice %13 {offsets = [16, 0], sizes = [8, 128], strides = [1, 1]} : vector<64x128xf32> to vector<8x128xf32>
    %159 = arith.select %33, %157, %158 : vector<8x128xi1>, vector<8x128xf32>
    %160 = arith.addf %156, %159 : vector<8x128xf32>
    %161 = arith.negf %160 : vector<8x128xf32>
    %162 = math.exp %161 : vector<8x128xf32>
    %cst_41 = arith.constant 1.000000e+00 : f32
    %163 = vector.broadcast %cst_41 : f32 to vector<8x128xf32>
    %164 = arith.addf %163, %162 : vector<8x128xf32>
    %165 = arith.divf %163, %164 : vector<8x128xf32>
    %166 = math.tanh %160 : vector<8x128xf32>
    %167 = vector.extract_strided_slice %165 {offsets = [0, 0], sizes = [8, 32], strides = [1, 1]} : vector<8x128xf32> to vector<8x32xf32>
    %168 = vector.extract_strided_slice %165 {offsets = [0, 32], sizes = [8, 32], strides = [1, 1]} : vector<8x128xf32> to vector<8x32xf32>
    %169 = vector.extract_strided_slice %166 {offsets = [0, 64], sizes = [8, 32], strides = [1, 1]} : vector<8x128xf32> to vector<8x32xf32>
    %170 = vector.extract_strided_slice %165 {offsets = [0, 96], sizes = [8, 32], strides = [1, 1]} : vector<8x128xf32> to vector<8x32xf32>
    %171 = arith.mulf %168, %149 : vector<8x32xf32>
    %172 = arith.mulf %167, %169 : vector<8x32xf32>
    %173 = arith.addf %171, %172 : vector<8x32xf32>
    %174 = math.tanh %173 : vector<8x32xf32>
    %175 = arith.mulf %170, %174 : vector<8x32xf32>
    %176 = vector.extract_strided_slice %175 {offsets = [0, 0], sizes = [8, 16], strides = [1, 1]} : vector<8x32xf32> to vector<8x16xf32>
    %c40_42 = arith.constant 40 : index
    %c32_43 = arith.constant 32 : index
    %177 = vector.load %arg10[%c40_42, %c32_43] : memref<64x64xf32, #tpu.memory_space<vmem>>, vector<8x16xf32>
    tpu.vector_store %arg10[%c40_42, %c32_43], %176 {strides = array<i32>} : memref<64x64xf32, #tpu.memory_space<vmem>>, vector<8x16xf32>,
    %178 = vector.extract_strided_slice %175 {offsets = [0, 16], sizes = [8, 16], strides = [1, 1]} : vector<8x32xf32> to vector<8x16xf32>
    %c16_44 = arith.constant 16 : index
    %c48_45 = arith.constant 48 : index
    %179 = vector.load %arg10[%c16_44, %c48_45] : memref<64x64xf32, #tpu.memory_space<vmem>>, vector<8x16xf32>
    tpu.vector_store %arg10[%c16_44, %c48_45], %178 {strides = array<i32>} : memref<64x64xf32, #tpu.memory_space<vmem>>, vector<8x16xf32>,
    %cst_46 = arith.constant dense<0.000000e+00> : vector<8x128xf32>
    %180 = tpu.matmul %175, %14, %cst_46 {dimension_numbers = #tpu.dot_dimension_numbers<[1], [0], [0], [1], [0, 0, 1, 1], [], []>} : vector<8x32xf32>, vector<32x128xf32>, vector<8x128xf32> -> vector<8x128xf32>
    %181 = vector.extract_strided_slice %13 {offsets = [48, 0], sizes = [8, 128], strides = [1, 1]} : vector<64x128xf32> to vector<8x128xf32>
    %182 = vector.extract_strided_slice %13 {offsets = [8, 0], sizes = [8, 128], strides = [1, 1]} : vector<64x128xf32> to vector<8x128xf32>
    %183 = arith.select %33, %181, %182 : vector<8x128xi1>, vector<8x128xf32>
    %184 = arith.addf %180, %183 : vector<8x128xf32>
    %185 = arith.negf %184 : vector<8x128xf32>
    %186 = math.exp %185 : vector<8x128xf32>
    %cst_47 = arith.constant 1.000000e+00 : f32
    %187 = vector.broadcast %cst_47 : f32 to vector<8x128xf32>
    %188 = arith.addf %187, %186 : vector<8x128xf32>
    %189 = arith.divf %187, %188 : vector<8x128xf32>
    %190 = math.tanh %184 : vector<8x128xf32>
    %191 = vector.extract_strided_slice %189 {offsets = [0, 0], sizes = [8, 32], strides = [1, 1]} : vector<8x128xf32> to vector<8x32xf32>
    %192 = vector.extract_strided_slice %189 {offsets = [0, 32], sizes = [8, 32], strides = [1, 1]} : vector<8x128xf32> to vector<8x32xf32>
    %193 = vector.extract_strided_slice %190 {offsets = [0, 64], sizes = [8, 32], strides = [1, 1]} : vector<8x128xf32> to vector<8x32xf32>
    %194 = vector.extract_strided_slice %189 {offsets = [0, 96], sizes = [8, 32], strides = [1, 1]} : vector<8x128xf32> to vector<8x32xf32>
    %195 = arith.mulf %192, %173 : vector<8x32xf32>
    %196 = arith.mulf %191, %193 : vector<8x32xf32>
    %197 = arith.addf %195, %196 : vector<8x32xf32>
    %198 = math.tanh %197 : vector<8x32xf32>
    %199 = arith.mulf %194, %198 : vector<8x32xf32>
    %200 = vector.extract_strided_slice %199 {offsets = [0, 0], sizes = [8, 16], strides = [1, 1]} : vector<8x32xf32> to vector<8x16xf32>
    %c48_48 = arith.constant 48 : index
    %c32_49 = arith.constant 32 : index
    %201 = vector.load %arg10[%c48_48, %c32_49] : memref<64x64xf32, #tpu.memory_space<vmem>>, vector<8x16xf32>
    tpu.vector_store %arg10[%c48_48, %c32_49], %200 {strides = array<i32>} : memref<64x64xf32, #tpu.memory_space<vmem>>, vector<8x16xf32>,
    %202 = vector.extract_strided_slice %199 {offsets = [0, 16], sizes = [8, 16], strides = [1, 1]} : vector<8x32xf32> to vector<8x16xf32>
    %c8_50 = arith.constant 8 : index
    %c48_51 = arith.constant 48 : index
    %203 = vector.load %arg10[%c8_50, %c48_51] : memref<64x64xf32, #tpu.memory_space<vmem>>, vector<8x16xf32>
    tpu.vector_store %arg10[%c8_50, %c48_51], %202 {strides = array<i32>} : memref<64x64xf32, #tpu.memory_space<vmem>>, vector<8x16xf32>,
    %cst_52 = arith.constant dense<0.000000e+00> : vector<8x128xf32>
    %204 = tpu.matmul %199, %14, %cst_52 {dimension_numbers = #tpu.dot_dimension_numbers<[1], [0], [0], [1], [0, 0, 1, 1], [], []>} : vector<8x32xf32>, vector<32x128xf32>, vector<8x128xf32> -> vector<8x128xf32>
    %205 = vector.extract_strided_slice %13 {offsets = [56, 0], sizes = [8, 128], strides = [1, 1]} : vector<64x128xf32> to vector<8x128xf32>
    %206 = vector.extract_strided_slice %13 {offsets = [0, 0], sizes = [8, 128], strides = [1, 1]} : vector<64x128xf32> to vector<8x128xf32>
    %207 = arith.select %33, %205, %206 : vector<8x128xi1>, vector<8x128xf32>
    %208 = arith.addf %204, %207 : vector<8x128xf32>
    %209 = arith.negf %208 : vector<8x128xf32>
    %210 = math.exp %209 : vector<8x128xf32>
    %cst_53 = arith.constant 1.000000e+00 : f32
    %211 = vector.broadcast %cst_53 : f32 to vector<8x128xf32>
    %212 = arith.addf %211, %210 : vector<8x128xf32>
    %213 = arith.divf %211, %212 : vector<8x128xf32>
    %214 = math.tanh %208 : vector<8x128xf32>
    %215 = vector.extract_strided_slice %213 {offsets = [0, 0], sizes = [8, 32], strides = [1, 1]} : vector<8x128xf32> to vector<8x32xf32>
    %216 = vector.extract_strided_slice %213 {offsets = [0, 32], sizes = [8, 32], strides = [1, 1]} : vector<8x128xf32> to vector<8x32xf32>
    %217 = vector.extract_strided_slice %214 {offsets = [0, 64], sizes = [8, 32], strides = [1, 1]} : vector<8x128xf32> to vector<8x32xf32>
    %218 = vector.extract_strided_slice %213 {offsets = [0, 96], sizes = [8, 32], strides = [1, 1]} : vector<8x128xf32> to vector<8x32xf32>
    %219 = arith.mulf %216, %197 : vector<8x32xf32>
    %220 = arith.mulf %215, %217 : vector<8x32xf32>
    %221 = arith.addf %219, %220 : vector<8x32xf32>
    %222 = math.tanh %221 : vector<8x32xf32>
    %223 = arith.mulf %218, %222 : vector<8x32xf32>
    %224 = vector.extract_strided_slice %223 {offsets = [0, 0], sizes = [8, 16], strides = [1, 1]} : vector<8x32xf32> to vector<8x16xf32>
    %c56_54 = arith.constant 56 : index
    %c32_55 = arith.constant 32 : index
    %225 = vector.load %arg10[%c56_54, %c32_55] : memref<64x64xf32, #tpu.memory_space<vmem>>, vector<8x16xf32>
    tpu.vector_store %arg10[%c56_54, %c32_55], %224 {strides = array<i32>} : memref<64x64xf32, #tpu.memory_space<vmem>>, vector<8x16xf32>,
    %226 = vector.extract_strided_slice %223 {offsets = [0, 16], sizes = [8, 16], strides = [1, 1]} : vector<8x32xf32> to vector<8x16xf32>
    %c0_56 = arith.constant 0 : index
    %c48_57 = arith.constant 48 : index
    %227 = vector.load %arg10[%c0_56, %c48_57] : memref<64x64xf32, #tpu.memory_space<vmem>>, vector<8x16xf32>
    tpu.vector_store %arg10[%c0_56, %c48_57], %226 {strides = array<i32>} : memref<64x64xf32, #tpu.memory_space<vmem>>, vector<8x16xf32>,
    %c0_58 = arith.constant 0 : index
    %c0_59 = arith.constant 0 : index
    %228 = vector.load %arg10[%c0_58, %c0_59] : memref<64x64xf32, #tpu.memory_space<vmem>>, vector<64x64xf32>
    %c0_60 = arith.constant 0 : index
    %c0_61 = arith.constant 0 : index
    %229 = vector.load %arg5[%c0_60, %c0_61] : memref<64x64xf32, #tpu.memory_space<vmem>>, vector<64x64xf32>
    %cst_62 = arith.constant dense<0.000000e+00> : vector<64x64xf32>
    %230 = tpu.matmul %228, %229, %cst_62 {dimension_numbers = #tpu.dot_dimension_numbers<[1], [0], [0], [1], [0, 0, 1, 1], [], []>} : vector<64x64xf32>, vector<64x64xf32>, vector<64x64xf32> -> vector<64x64xf32>
    %c0_63 = arith.constant 0 : index
    %c0_64 = arith.constant 0 : index
    %231 = vector.load %arg6[%c0_63, %c0_64] : memref<1x64xf32, #tpu.memory_space<vmem>>, vector<1x64xf32>
    %232 = vector.broadcast %231 : vector<1x64xf32> to vector<64x64xf32>
    %233 = arith.addf %230, %232 : vector<64x64xf32>
    %234 = math.tanh %233 : vector<64x64xf32>
    %235 = vector.extract_strided_slice %234 {offsets = [0, 0], sizes = [8, 64], strides = [1, 1]} : vector<64x64xf32> to vector<8x64xf32>
    %236 = vector.extract_strided_slice %234 {offsets = [8, 0], sizes = [8, 64], strides = [1, 1]} : vector<64x64xf32> to vector<8x64xf32>
    %237 = arith.maximumf %235, %236 : vector<8x64xf32>
    %238 = vector.extract_strided_slice %234 {offsets = [16, 0], sizes = [8, 64], strides = [1, 1]} : vector<64x64xf32> to vector<8x64xf32>
    %239 = arith.maximumf %237, %238 : vector<8x64xf32>
    %240 = vector.extract_strided_slice %234 {offsets = [24, 0], sizes = [8, 64], strides = [1, 1]} : vector<64x64xf32> to vector<8x64xf32>
    %241 = arith.maximumf %239, %240 : vector<8x64xf32>
    %242 = vector.extract_strided_slice %234 {offsets = [32, 0], sizes = [8, 64], strides = [1, 1]} : vector<64x64xf32> to vector<8x64xf32>
    %243 = arith.maximumf %241, %242 : vector<8x64xf32>
    %244 = vector.extract_strided_slice %234 {offsets = [40, 0], sizes = [8, 64], strides = [1, 1]} : vector<64x64xf32> to vector<8x64xf32>
    %245 = arith.maximumf %243, %244 : vector<8x64xf32>
    %246 = vector.extract_strided_slice %234 {offsets = [48, 0], sizes = [8, 64], strides = [1, 1]} : vector<64x64xf32> to vector<8x64xf32>
    %247 = arith.maximumf %245, %246 : vector<8x64xf32>
    %248 = vector.extract_strided_slice %234 {offsets = [56, 0], sizes = [8, 64], strides = [1, 1]} : vector<64x64xf32> to vector<8x64xf32>
    %249 = arith.maximumf %247, %248 : vector<8x64xf32>
    %c0_65 = arith.constant 0 : index
    %c0_66 = arith.constant 0 : index
    %250 = vector.load %arg7[%c0_65, %c0_66] : memref<64x128xf32, #tpu.memory_space<vmem>>, vector<64x128xf32>
    %cst_67 = arith.constant dense<0.000000e+00> : vector<8x128xf32>
    %251 = tpu.matmul %249, %250, %cst_67 {dimension_numbers = #tpu.dot_dimension_numbers<[1], [0], [0], [1], [0, 0, 1, 1], [], []>} : vector<8x64xf32>, vector<64x128xf32>, vector<8x128xf32> -> vector<8x128xf32>
    %c0_68 = arith.constant 0 : index
    %c0_69 = arith.constant 0 : index
    %252 = vector.load %arg8[%c0_68, %c0_69] : memref<1x128xf32, #tpu.memory_space<vmem>>, vector<1x128xf32>
    %253 = vector.broadcast %252 : vector<1x128xf32> to vector<8x128xf32>
    %254 = arith.addf %251, %253 : vector<8x128xf32>
    %c0_70 = arith.constant 0 : index
    %c0_71 = arith.constant 0 : index
    %255 = vector.load %arg9[%c0_70, %c0_71] : memref<8x128xf32, #tpu.memory_space<vmem>>, vector<8x128xf32>
    tpu.vector_store %arg9[%c0_70, %c0_71], %254 {strides = array<i32>} : memref<8x128xf32, #tpu.memory_space<vmem>>, vector<8x128xf32>,
    return
  }
}

</mosaic_0001>

<bundles_post_ra>
// kernel: rcnn_forward.1
= control target key start
LH: loop header
LB: loop body
LE: loop exit
PB: predicated region body
PF: predicated region fallthrough
CT: control target
= control target key end

     0   :  { %14 = vsyncpa [#allocation4], 0  ;;  %s2566_s0 = inlined_call_operand.vmem [shape: s32[64,1], index: 0, kind: input, shape index: {}]   ;;  %s2567_s1 = inlined_call_operand.vmem [shape: f32[50,32], index: 1, kind: input, shape index: {}]   ;;  %s2568_s2 = inlined_call_operand.vmem [shape: f32[32,128], index: 2, kind: input, shape index: {}]   ;;  %s2569_s3 = inlined_call_operand.vmem [shape: f32[32,128], index: 3, kind: input, shape index: {}]   ;;  %s2570_s4 = inlined_call_operand.vmem [shape: f32[1,128], index: 4, kind: input, shape index: {}]   ;;  %s2571_s5 = inlined_call_operand.vmem [shape: f32[64,64], index: 5, kind: input, shape index: {}]   ;;  %s2572_s6 = inlined_call_operand.vmem [shape: f32[1,64], index: 6, kind: input, shape index: {}]   ;;  %s2573_s7 = inlined_call_operand.vmem [shape: f32[64,128], index: 7, kind: input, shape index: {}]   ;;  %s2574_s8 = inlined_call_operand.hbm [shape: f32[1,128], index: 8, kind: input, shape index: {}]   ;;  %s2575_s9 = inlined_call_operand.hbm [shape: f32[8,128], index: 9, kind: output, shape index: {}]  }
   0x1   :  { %15 = vsyncpa [#allocation5], 0  ;;  %s2082_s30 = smov [#allocation3]   ;;  %s2034_s13 = scalar_lea.hbm %s2574_s8, 16 }
   0x2   :  { %s38_s10 = sshll.u32 %s2082_s30, 4  ;;  %p2035_p0 = scmp.ne.s32.totalorder %s2574_s8, %s2034_s13  ;;  %s39_s10 = int_to_ptr.vmem [resolvable:$true] %s38_s10 }
   0x3   :  { %p2038_p1 = scmp.lt.u32.totalorder %s2034_s13, %s2574_s8 }
   0x5   :  { %p2040_p2 = pnand %p2038_p1, %p2035_p0 }
   0x7   :  { %2043 = shalt.err (!%p2040_p2)
}
   0x8   :  { %s2044_s18 = scalar_lea.vmem %s39_s10, 16  ;;  %s2048_s19 = scalar_lea.vmem %s39_s10, 32 }
   0x9   :  { %p2045_p3 = scmp.ne.s32.totalorder %s39_s10, %s2044_s18  ;;  %p2049_p4 = scmp.lt.s32.totalorder %s39_s10, %s39_s10 }
   0xa   :  { %p2050_p5 = scmp.lt.s32.totalorder %s2048_s19, %s2044_s18 }
   0xc   :  { %p2051_p6 = por %p2050_p5, %p2049_p4 }
   0xe   :  { %p2052_p7 = pnand %p2051_p6, %p2045_p3 }
  0x10   :  { %2055 = shalt.err (!%p2052_p7)
}
  0x11   :  { %41 = dma.hbm_to_vmem [thread:$0]  %s2574_s8, 16, %s39_s10, [#allocation4]  }
  0x12   :  { %2078 = dma.done.wait [#allocation4], 16  }
  0x13   :  { %2079 = vsyncadd [#allocation4], 4294967280  ;;  %v2083_v0 = vmov 0   ;;  %v47_v1 = vld [vmem:[%s2566_s0 + $0x10] sm:$0xff]  ;;  %v45_v2 = vld [vmem:[%s2566_s0] sm:$0xff]  ;;  %vm135_vm0 = vcmask 1041408   ;;  %v53_v25 = vlaneseq }
  0x14   :  { %1953 = vset.pattern.permute.xlu1 %v2083_v0  ;;  %1952 = vset.pattern.permute.xlu0 %v2083_v0  ;;  %v48_v3 = vld [vmem:[%s2566_s0 + $0x18] sm:$0xff]  ;;  %v46_v4 = vld [vmem:[%s2566_s0 + $0x8] sm:$0xff]  ;;  %v103_v5 = vld [vmem:[%s2567_s1] sm:$0xff]  ;;  %vm110_vm1 = vcmask 408576   ;;  %v2084_v29 = vmov 0.0   ;;  %v2085_v44 = vmov 0.0|0.0  }
  0x15   :  { %62 = vperm.xlu1 %1953, %v47_v1   ;;  %56 = vperm.xlu0 %1952, %v45_v2   ;;  %v104_v6 = vld [vmem:[%s2567_s1 + $0x8] sm:$0xff]  ;;  %v105_v7 = vld [vmem:[%s2567_s1 + $0x10] sm:$0xff]  ;;  %v106_v8 = vld [vmem:[%s2567_s1 + $0x18] sm:$0xff]  ;;  %v2209_v26 = vand.u32 127, %v53_v25  ;;  %vm2086_vm10 = vmmov 0   ;;  %vm244_vm11 = vcmask 261120  }
  0x16   :  { %v1848_v9 = vpack.c.bf16 %v104_v6, %v103_v5  ;;  %v1852_v10 = vpack.c.bf16 %v106_v8, %v105_v7  ;;  %v107_v11 = vld [vmem:[%s2567_s1 + $0x20] sm:$0xff]  ;;  %v108_v12 = vld [vmem:[%s2567_s1 + $0x28] sm:$0xff]  ;;  %v52_v16 = vld [vmem:[%s2566_s0 + $0x38] sm:$0xff]  ;;  %s2088_s22 = smov 32   ;;  %vm512_vm13 = vcmask 392448   ;;  %vm514_vm14 = vcmask 523648  }
  0x17   :  { %v50_v13 = vld [vmem:[%s2566_s0 + $0x28] sm:$0xff]  ;;  %v49_v14 = vld [vmem:[%s2566_s0 + $0x20] sm:$0xff]  ;;  %v1856_v15 = vpack.c.bf16 %v108_v12, %v107_v11  ;;  %v51_v17 = vld [vmem:[%s2566_s0 + $0x30] sm:$0xff]  ;;  %v401_v0 = vand.u32 31, %v2209_v26  ;;  %vm1274_vm15 = vcmask 523264  }
  0x18   :  { %1849 = vmatprep.subr.bf16.mxu0 %v1848_v9  ;;  %v109_v18 = vld [vmem:[%s2567_s1 + $0x30] sm:$0x3]  ;;  %v253_v19 = vld [vmem:[%s2568_s2] sm:$0xff]  ;;  %v254_v20 = vld [vmem:[%s2568_s2 + $0x8] sm:$0xff] }
  0x19   :  { %65 = vperm.xlu1 %1953, %v48_v3   ;;  %59 = vperm.xlu0 %1952, %v46_v4   ;;  %v255_v21 = vld [vmem:[%s2568_s2 + $0x10] sm:$0xff]  ;;  %v1860_v22 = vpack.c.bf16 %v254_v20, %v253_v19  ;;  %v256_v23 = vld [vmem:[%s2568_s2 + $0x18] sm:$0xff]  ;;  %v393_v45 = vld [vmem:[%s2569_s3] sm:$0xff]  ;;  %vm2298_vm12 = vcmp.lt.s32.totalorder %v401_v0, 16 }
  0x1a   :  { %1851 = vmatpush3.bf16.msra.mxu0 %v1848_v9  ;;  %v1864_v24 = vpack.c.bf16 %v256_v23, %v255_v21  ;;  %v394_v46 = vld [vmem:[%s2569_s3 + $0x8] sm:$0xff]  ;;  %v395_v48 = vld [vmem:[%s2569_s3 + $0x10] sm:$0xff]  ;;  %v396_v49 = vld [vmem:[%s2569_s3 + $0x18] sm:$0xff] }
  0x1b   :  { %1853 = vmatprep.subr.bf16.mxu0 %v1852_v10  ;;  %1861 = vmatprep.subr.bf16.mxu1 %v1860_v22  ;;  %v2243_v47 = vpack.c.bf16 %v394_v46, %v393_v45  ;;  %v2253_v50 = vpack.c.bf16 %v396_v49, %v395_v48  ;;  %v1540_v59 = vld [vmem:[%s2570_s4] ss:$0 sm:$0xff]  ;;  %s2087_s4 = smov 64  }
  0x1c   :  { %1863 = vmatpush3.bf16.msra.mxu1 %v1860_v22 }
  0x1d   :  { %71 = vperm.xlu1 %1953, %v50_v13   ;;  %68 = vperm.xlu0 %1952, %v49_v14  }
  0x1e   :  { %1855 = vmatpush3.bf16.msra.mxu0 %v1852_v10  ;;  %1865 = vmatprep.subr.bf16.mxu1 %v1864_v24 }
  0x1f   :  { %1857 = vmatprep.subr.bf16.mxu0 %v1856_v15 }
  0x20   :  { %1867 = vmatpush3.bf16.msra.mxu1 %v1864_v24 }
  0x21   :  { %77 = vperm.xlu1 %1953, %v52_v16   ;;  %74 = vperm.xlu0 %1952, %v51_v17  }
  0x22   :  { %1859 = vmatpush3.bf16.msra.mxu0 %v1856_v15  ;;  %1868 = vmatprep.subr.bf16.mxu1 %v2085_v44 }
  0x23   :  { %1679 = vmatprep.subr.msk.mxu0 %vm135_vm0, %v109_v18 }
  0x26   :  { %1680 = vmatpush3.msk.msra.mxu0 %vm135_vm0, %v109_v18 }
  0x27   :  { %1874 = vmatprep.subr.bf16.mxu0 %v2085_v44 }
  0x94   :  { %v63_v27 = vpop.permute.xlu1 %62  ;;  %v57_v28 = vpop.permute.xlu0 %56 }
  0x95   :  { %vm79_vm2 = vcmp.eq.s32.totalorder %v2209_v26, %v57_v28  ;;  %vm81_vm3 = vcmp.eq.s32.totalorder %v2209_v26, %v63_v27 }
  0x96   :  { %v1523_v30 = vsel %vm79_vm2, 1.0, %v2084_v29  ;;  %v1525_v33 = vsel %vm81_vm3, 1.0, %v2084_v29 }
  0x97   :  { %1681 = vmatprep.mubr.msk.f32.mxu0 %vm110_vm1, %v1523_v30 }
  0x98   :  { %v66_v31 = vpop.permute.xlu1 %65  ;;  %v60_v32 = vpop.permute.xlu0 %59 }
  0x99   :  { %vm80_vm4 = vcmp.eq.s32.totalorder %v2209_v26, %v60_v32  ;;  %vm82_vm5 = vcmp.eq.s32.totalorder %v2209_v26, %v66_v31 }
  0x9a   :  { %v1524_v34 = vsel %vm80_vm4, 1.0, %v2084_v29  ;;  %v1526_v37 = vsel %vm82_vm5, 1.0, %v2084_v29 }
  0x9b   :  { %1682 = vmatmul.mubr.msk.f32.vlgmr.msra.gmra.mrb[0].mxu0 %vm110_vm1, %v1524_v34 }
  0x9c   :  { %v72_v35 = vpop.permute.xlu1 %71  ;;  %1684 = vmatprep.mubr.msk.f32.mxu0 %vm110_vm1, %v1525_v33  ;;  %v69_v36 = vpop.permute.xlu0 %68  ;;  %1876 = vmatpush3.bf16.msra.mxu0 %v2243_v47 }
  0x9d   :  { %vm83_vm6 = vcmp.eq.s32.totalorder %v2209_v26, %v69_v36  ;;  %vm84_vm7 = vcmp.eq.s32.totalorder %v2209_v26, %v72_v35  ;;  %1877 = vmatprep.subr.bf16.mxu0 %v2085_v44 }
  0x9e   :  { %v1527_v38 = vsel %vm83_vm6, 1.0, %v2084_v29  ;;  %v1528_v41 = vsel %vm84_vm7, 1.0, %v2084_v29 }
  0x9f   :  { %1685 = vmatmul.mubr.msk.f32.gmra.mrb[2].mxu0 %vm110_vm1, %v1526_v37 }
  0xa0   :  { %v78_v39 = vpop.permute.xlu1 %77  ;;  %1687 = vmatprep.mubr.msk.f32.mxu0 %vm110_vm1, %v1527_v38  ;;  %v75_v40 = vpop.permute.xlu0 %74  ;;  %1879 = vmatpush3.bf16.msra.mxu0 %v2253_v50 }
  0xa1   :  { %vm85_vm8 = vcmp.eq.s32.totalorder %v2209_v26, %v75_v40  ;;  %vm86_vm9 = vcmp.eq.s32.totalorder %v2209_v26, %v78_v39  ;;  %1886 = vmatprep.subr.bf16.mxu0 %v2085_v44 }
  0xa2   :  { %v1529_v42 = vsel %vm85_vm8, 1.0, %v2084_v29  ;;  %v1530_v43 = vsel %vm86_vm9, 1.0, %v2084_v29 }
  0xa3   :  { %1688 = vmatmul.mubr.msk.f32.gmra.mrb[4].mxu0 %vm110_vm1, %v1528_v41 }
  0xa4   :  { %1690 = vmatprep.mubr.msk.f32.mxu0 %vm110_vm1, %v1529_v42 }
  0xa7   :  { %1691 = vmatmul.mubr.msk.f32.gmra.mrb[6].mxu0 %vm110_vm1, %v1530_v43 }
  0xa8   :  { %1732 = vmatprep.mubr.msk.f32.mxu0 %vm2086_vm10, %v2084_v29 }
 0x16e   :  { %v1683_v51 = vpop.f32.mrb[0].mxu0 }
 0x16f   :  { %246 = vst.msk [vmem:[#allocation2 + $0x8] sm:$0xff] %vm244_vm11, %v1683_v51  ;;  %v205_v52 = vpop.f32.mrb[1].mxu0 }
 0x170   :  { %245 = vst.msk [vmem:[#allocation2] sm:$0xff] %vm244_vm11, %v205_v52  ;;  %1701 = vmatprep.mubr.msk.f32.mxu1 %vm244_vm11, %v205_v52 }
 0x171   :  { %1702 = vmatmul.mubr.msk.f32.vlgmr.msra.gmra.mrb[0].mxu1 %vm244_vm11, %v1683_v51 }
 0x172   :  { %1870 = vmatpush3.bf16.msra.mxu1 %v2243_v47  ;;  %v1686_v53 = vpop.f32.mrb[2].mxu0 }
 0x173   :  { %248 = vst.msk [vmem:[#allocation2 + $0x18] sm:$0xff] %vm244_vm11, %v1686_v53  ;;  %v215_v54 = vpop.f32.mrb[3].mxu0  ;;  %1871 = vmatprep.subr.bf16.mxu1 %v2085_v44 }
 0x174   :  { %247 = vst.msk [vmem:[#allocation2 + $0x10] sm:$0xff] %vm244_vm11, %v215_v54  ;;  %1704 = vmatprep.mubr.msk.f32.mxu1 %vm244_vm11, %v215_v54 }
 0x175   :  { %1705 = vmatmul.mubr.msk.f32.gmra.mrb[2].mxu1 %vm244_vm11, %v1686_v53 }
 0x176   :  { %v1689_v55 = vpop.f32.mrb[4].mxu0  ;;  %1873 = vmatpush3.bf16.msra.mxu1 %v2253_v50 }
 0x177   :  { %250 = vst.msk [vmem:[#allocation2 + $0x28] sm:$0xff] %vm244_vm11, %v1689_v55  ;;  %v225_v56 = vpop.f32.mrb[5].mxu0  ;;  %1880 = vmatprep.subr.bf16.mxu1 %v2085_v44 }
 0x178   :  { %249 = vst.msk [vmem:[#allocation2 + $0x20] sm:$0xff] %vm244_vm11, %v225_v56  ;;  %1707 = vmatprep.mubr.msk.f32.mxu1 %vm244_vm11, %v225_v56 }
 0x179   :  { %1708 = vmatmul.mubr.msk.f32.gmra.mrb[4].mxu1 %vm244_vm11, %v1689_v55 }
 0x17a   :  { %v1692_v57 = vpop.f32.mrb[6].mxu0 }
 0x17b   :  { %252 = vst.msk [vmem:[#allocation2 + $0x38] sm:$0xff] %vm244_vm11, %v1692_v57  ;;  %v235_v58 = vpop.f32.mrb[7].mxu0 }
 0x17c   :  { %251 = vst.msk [vmem:[#allocation2 + $0x30] sm:$0xff] %vm244_vm11, %v235_v58  ;;  %1710 = vmatprep.mubr.msk.f32.mxu1 %vm244_vm11, %v235_v58 }
 0x17d   :  { %1711 = vmatmul.mubr.msk.f32.gmra.mrb[6].mxu1 %vm244_vm11, %v1692_v57 }
 0x17e   :  { %1721 = vmatprep.mubr.msk.f32.mxu1 %vm2086_vm10, %v2084_v29 }
 0x181   :  { %1722 = vmatmul.mubr.f32.vlgmr.msra.gmra.mrb[8].mxu1 %v2084_v29 }
 0x182   :  { %1882 = vmatpush3.bf16.msra.mxu1 %v2243_v47  ;;  %1743 = vmatprep.mubr.msk.f32.mxu1 %vm2086_vm10, %v2084_v29 }
 0x183   :  { %1883 = vmatprep.subr.bf16.mxu1 %v2085_v44 }
 0x186   :  { %1885 = vmatpush3.bf16.msra.mxu1 %v2253_v50 }
 0x187   :  { %1892 = vmatprep.subr.bf16.mxu1 %v2085_v44 }
 0x244   :  { %v1703_v60 = vpop.f32.mrb[0].mxu1 }
 0x245   :  { %v2291_v61 = vadd.f32 %v1703_v60, %v1540_v59  ;;  %v354_v62 = vpop.f32.mrb[1].mxu1 }
 0x246   :  { %v2322_v14 = vadd.f32 %v1540_v59, %v354_v62 }
 0x248   :  { %v1706_v63 = vpop.f32.mrb[2].mxu1 }
 0x249   :  { %v2294_v1 = vadd.f32 %v1706_v63, %v1540_v59  ;;  %v364_v2 = vpop.f32.mrb[3].mxu1 }
 0x24a   :  { %v2296_v3 = vadd.f32 %v1540_v59, %v364_v2 }
 0x24c   :  { %v1709_v4 = vpop.f32.mrb[4].mxu1 }
 0x24d   :  { %v2302_v6 = vadd.f32 %v1709_v4, %v1540_v59  ;;  %v374_v7 = vpop.f32.mrb[5].mxu1 }
 0x24e   :  { %v2304_v8 = vadd.f32 %v1540_v59, %v374_v7 }
 0x24f   :  { %v621_v9 = vsel %vm2298_vm12, %v2296_v3, %v2302_v6  ;;  %v936_v10 = vsel %vm2298_vm12, %v2302_v6, %v2296_v3 }
 0x250   :  { %v1712_v11 = vpop.f32.mrb[6].mxu1  ;;  %v726_v12 = vsel %vm2298_vm12, %v2294_v1, %v2304_v8  ;;  %v831_v13 = vsel %vm2298_vm12, %v2304_v8, %v2294_v1 }
 0x251   :  { %v2324_v15 = vadd.f32 %v1712_v11, %v1540_v59  ;;  %v384_v16 = vpop.f32.mrb[7].mxu1 }
 0x252   :  { %v2326_v17 = vadd.f32 %v1540_v59, %v384_v16 }
 0x253   :  { %v410_v18 = vsel %vm2298_vm12, %v2322_v14, %v2324_v15  ;;  %v1146_v19 = vsel %vm2298_vm12, %v2324_v15, %v2322_v14 }
 0x254   :  { %v480_v20 = vpop.f32.mrb[8].mxu1  ;;  %v516_v21 = vsel %vm2298_vm12, %v2291_v61, %v2326_v17  ;;  %v1041_v22 = vsel %vm2298_vm12, %v2326_v17, %v2291_v61 }
 0x255   :  { %v481_v23 = vadd.f32 %v480_v20, %v410_v18  ;;  %v1723_v24 = vpop.f32.mrb[9].mxu1 }
 0x257   :  { %1954 = vtanh.f32 %v481_v23  ;;  %v1549_v26 = vmul.f32 -1.442695, %v481_v23 }
 0x259   :  { %1956 = vpow2.f32 %v1549_v26 }
 0x261   :  { %v1955_v25 = vpop.eup %1954 }
 0x262   :  { %493 = vrot.lane.b32.xlu0 %v1955_v25, %s2087_s4 }
 0x263   :  { %v1957_v27 = vpop.eup %1956 }
 0x264   :  { %v487_v28 = vadd.f32 1.0, %v1957_v27 }
 0x266   :  { %1958 = vrcp.f32 %v487_v28 }
 0x270   :  { %v1959_v30 = vpop.eup %1958 }
 0x271   :  { %v491_v33 = vmul.f32 0.0, %v1959_v30 }
 0x2d4   :  { %v494_v31 = vpop.permute.xlu0 %493 }
 0x2d5   :  { %v496_v32 = vmul.f32 %v1959_v30, %v494_v31 }
 0x2d7   :  { %498 = vrot.lane.b32.xlu1 %v496_v32, %s2088_s22 }
 0x349   :  { %v499_v34 = vpop.permute.xlu1 %498 }
 0x34a   :  { %v501_v35 = vadd.f32 %v499_v34, %v491_v33 }
 0x34c   :  { %1960 = vtanh.f32 %v501_v35 }
 0x356   :  { %v1961_v36 = vpop.eup %1960 }
 0x357   :  { %504 = vrot.lane.b32.xlu0 %v1961_v36, %s2087_s4 }
 0x3c9   :  { %v505_v37 = vpop.permute.xlu0 %504 }
 0x3ca   :  { %v2347_v38 = vmul.f32 %v1959_v30, %v505_v37 }
 0x3cc   :  { %517 = vrot.lane.b32.xlu1 %v2347_v38, %s2088_s22 }
 0x43e   :  { %v518_v39 = vpop.permute.xlu1 %517 }
 0x43f   :  { %1733 = vmatmul.mubr.msk.f32.vlgmr.msra.gmra.mrb[8].mxu0 %vm244_vm11, %v518_v39 }
 0x440   :  { %1888 = vmatpush3.bf16.msra.mxu0 %v2243_v47  ;;  %1754 = vmatprep.mubr.msk.f32.mxu0 %vm2086_vm10, %v2084_v29 }
 0x441   :  { %1889 = vmatprep.subr.bf16.mxu0 %v2085_v44 }
 0x444   :  { %1891 = vmatpush3.bf16.msra.mxu0 %v2253_v50 }
 0x445   :  { %1898 = vmatprep.subr.bf16.mxu0 %v2085_v44 }
 0x512   :  { %v587_v40 = vpop.f32.mrb[8].mxu0 }
 0x513   :  { %v588_v41 = vadd.f32 %v587_v40, %v516_v21  ;;  %v1734_v42 = vpop.f32.mrb[9].mxu0 }
 0x515   :  { %1962 = vtanh.f32 %v588_v41  ;;  %v1551_v45 = vmul.f32 -1.442695, %v588_v41 }
 0x517   :  { %1964 = vpow2.f32 %v1551_v45 }
 0x51f   :  { %v1963_v43 = vpop.eup %1962 }
 0x520   :  { %600 = vrot.lane.b32.xlu0 %v1963_v43, %s2087_s4 }
 0x521   :  { %v1965_v46 = vpop.eup %1964 }
 0x522   :  { %v594_v48 = vadd.f32 1.0, %v1965_v46 }
 0x524   :  { %1966 = vrcp.f32 %v594_v48 }
 0x52e   :  { %v1967_v49 = vpop.eup %1966 }
 0x52f   :  { %v598_v53 = vmul.f32 %v1967_v49, %v501_v35 }
 0x592   :  { %v601_v51 = vpop.permute.xlu0 %600 }
 0x593   :  { %v603_v52 = vmul.f32 %v1967_v49, %v601_v51 }
 0x595   :  { %605 = vrot.lane.b32.xlu1 %v603_v52, %s2088_s22 }
 0x607   :  { %v606_v54 = vpop.permute.xlu1 %605 }
 0x608   :  { %v608_v55 = vadd.f32 %v606_v54, %v598_v53 }
 0x60a   :  { %1968 = vtanh.f32 %v608_v55 }
 0x614   :  { %v1969_v56 = vpop.eup %1968 }
 0x615   :  { %611 = vrot.lane.b32.xlu0 %v1969_v56, %s2087_s4 }
 0x687   :  { %v612_v57 = vpop.permute.xlu0 %611 }
 0x688   :  { %v2361_v58 = vmul.f32 %v1967_v49, %v612_v57 }
 0x68a   :  { %622 = vrot.lane.b32.xlu1 %v2361_v58, %s2088_s22 }
 0x6fc   :  { %v623_v59 = vpop.permute.xlu1 %622 }
 0x6fd   :  { %1744 = vmatmul.mubr.msk.f32.vlgmr.msra.gmra.mrb[10].mxu1 %vm244_vm11, %v623_v59 }
 0x6fe   :  { %1894 = vmatpush3.bf16.msra.mxu1 %v2243_v47  ;;  %1765 = vmatprep.mubr.msk.f32.mxu1 %vm2086_vm10, %v2084_v29 }
 0x6ff   :  { %1895 = vmatprep.subr.bf16.mxu1 %v2085_v44 }
 0x702   :  { %1897 = vmatpush3.bf16.msra.mxu1 %v2253_v50 }
 0x703   :  { %1904 = vmatprep.subr.bf16.mxu1 %v2085_v44 }
 0x7d0   :  { %v692_v60 = vpop.f32.mrb[10].mxu1 }
 0x7d1   :  { %v693_v62 = vadd.f32 %v692_v60, %v621_v9  ;;  %v1745_v63 = vpop.f32.mrb[11].mxu1 }
 0x7d3   :  { %1970 = vtanh.f32 %v693_v62  ;;  %v1553_v2 = vmul.f32 -1.442695, %v693_v62 }
 0x7d5   :  { %1972 = vpow2.f32 %v1553_v2 }
 0x7dd   :  { %v1971_v0 = vpop.eup %1970 }
 0x7de   :  { %705 = vrot.lane.b32.xlu0 %v1971_v0, %s2087_s4 }
 0x7df   :  { %v1973_v4 = vpop.eup %1972 }
 0x7e0   :  { %v699_v7 = vadd.f32 1.0, %v1973_v4 }
 0x7e2   :  { %1974 = vrcp.f32 %v699_v7 }
 0x7ec   :  { %v1975_v11 = vpop.eup %1974 }
 0x7ed   :  { %v703_v20 = vmul.f32 %v1975_v11, %v608_v55 }
 0x850   :  { %v706_v16 = vpop.permute.xlu0 %705 }
 0x851   :  { %v708_v18 = vmul.f32 %v1975_v11, %v706_v16 }
 0x853   :  { %710 = vrot.lane.b32.xlu1 %v708_v18, %s2088_s22 }
 0x8c5   :  { %v711_v21 = vpop.permute.xlu1 %710 }
 0x8c6   :  { %v713_v23 = vadd.f32 %v711_v21, %v703_v20 }
 0x8c8   :  { %1976 = vtanh.f32 %v713_v23 }
 0x8d2   :  { %v1977_v9 = vpop.eup %1976 }
 0x8d3   :  { %716 = vrot.lane.b32.xlu0 %v1977_v9, %s2087_s4 }
 0x945   :  { %v717_v24 = vpop.permute.xlu0 %716 }
 0x946   :  { %v2380_v25 = vmul.f32 %v1975_v11, %v717_v24 }
 0x948   :  { %727 = vrot.lane.b32.xlu1 %v2380_v25, %s2088_s22 }
 0x9ba   :  { %v728_v26 = vpop.permute.xlu1 %727 }
 0x9bb   :  { %1755 = vmatmul.mubr.msk.f32.vlgmr.msra.gmra.mrb[10].mxu0 %vm244_vm11, %v728_v26 }
 0x9bc   :  { %1900 = vmatpush3.bf16.msra.mxu0 %v2243_v47  ;;  %1776 = vmatprep.mubr.msk.f32.mxu0 %vm2086_vm10, %v2084_v29 }
 0x9bd   :  { %1901 = vmatprep.subr.bf16.mxu0 %v2085_v44 }
 0x9c0   :  { %1903 = vmatpush3.bf16.msra.mxu0 %v2253_v50 }
 0x9c1   :  { %1910 = vmatprep.subr.bf16.mxu0 %v2085_v44 }
 0xa8e   :  { %v797_v27 = vpop.f32.mrb[10].mxu0 }
 0xa8f   :  { %v798_v28 = vadd.f32 %v797_v27, %v726_v12  ;;  %v1756_v30 = vpop.f32.mrb[11].mxu0 }
 0xa91   :  { %1978 = vtanh.f32 %v798_v28  ;;  %v1555_v32 = vmul.f32 -1.442695, %v798_v28 }
 0xa93   :  { %1980 = vpow2.f32 %v1555_v32 }
 0xa9b   :  { %v1979_v31 = vpop.eup %1978 }
 0xa9c   :  { %810 = vrot.lane.b32.xlu0 %v1979_v31, %s2087_s4 }
 0xa9d   :  { %v1981_v33 = vpop.eup %1980 }
 0xa9e   :  { %v804_v34 = vadd.f32 1.0, %v1981_v33 }
 0xaa0   :  { %1982 = vrcp.f32 %v804_v34 }
 0xaaa   :  { %v1983_v35 = vpop.eup %1982 }
 0xaab   :  { %v808_v39 = vmul.f32 %v1983_v35, %v713_v23 }
 0xb0e   :  { %v811_v36 = vpop.permute.xlu0 %810 }
 0xb0f   :  { %v813_v37 = vmul.f32 %v1983_v35, %v811_v36 }
 0xb11   :  { %815 = vrot.lane.b32.xlu1 %v813_v37, %s2088_s22 }
 0xb83   :  { %v816_v40 = vpop.permute.xlu1 %815 }
 0xb84   :  { %v818_v41 = vadd.f32 %v816_v40, %v808_v39 }
 0xb86   :  { %1984 = vtanh.f32 %v818_v41 }
 0xb90   :  { %v1985_v12 = vpop.eup %1984 }
 0xb91   :  { %821 = vrot.lane.b32.xlu0 %v1985_v12, %s2087_s4 }
 0xc03   :  { %v822_v42 = vpop.permute.xlu0 %821 }
 0xc04   :  { %v2399_v43 = vmul.f32 %v1983_v35, %v822_v42 }
 0xc06   :  { %832 = vrot.lane.b32.xlu1 %v2399_v43, %s2088_s22 }
 0xc78   :  { %v833_v45 = vpop.permute.xlu1 %832 }
 0xc79   :  { %1766 = vmatmul.mubr.msk.f32.vlgmr.msra.gmra.mrb[12].mxu1 %vm244_vm11, %v833_v45 }
 0xc7a   :  { %1906 = vmatpush3.bf16.msra.mxu1 %v2243_v47  ;;  %1787 = vmatprep.mubr.msk.f32.mxu1 %vm2086_vm10, %v2084_v29 }
 0xc7b   :  { %1907 = vmatprep.subr.bf16.mxu1 %v2085_v44 }
 0xc7e   :  { %1909 = vmatpush3.bf16.msra.mxu1 %v2253_v50 }
 0xd4c   :  { %v902_v46 = vpop.f32.mrb[12].mxu1 }
 0xd4d   :  { %v903_v48 = vadd.f32 %v902_v46, %v831_v13  ;;  %v1767_v49 = vpop.f32.mrb[13].mxu1 }
 0xd4f   :  { %1986 = vtanh.f32 %v903_v48  ;;  %v1557_v52 = vmul.f32 -1.442695, %v903_v48 }
 0xd51   :  { %1988 = vpow2.f32 %v1557_v52 }
 0xd59   :  { %v1987_v51 = vpop.eup %1986 }
 0xd5a   :  { %915 = vrot.lane.b32.xlu0 %v1987_v51, %s2087_s4 }
 0xd5b   :  { %v1989_v53 = vpop.eup %1988 }
 0xd5c   :  { %v909_v54 = vadd.f32 1.0, %v1989_v53 }
 0xd5e   :  { %1990 = vrcp.f32 %v909_v54 }
 0xd68   :  { %v1991_v55 = vpop.eup %1990 }
 0xd69   :  { %v913_v59 = vmul.f32 %v1991_v55, %v818_v41 }
 0xdcc   :  { %v916_v56 = vpop.permute.xlu0 %915 }
 0xdcd   :  { %v918_v57 = vmul.f32 %v1991_v55, %v916_v56  ;;  %v1261_v56 = vld [vmem:[%s2571_s5 + $0x10] sm:$0xff] }
 0xdcf   :  { %920 = vrot.lane.b32.xlu1 %v918_v57, %s2088_s22 }
 0xe41   :  { %v921_v60 = vpop.permute.xlu1 %920 }
 0xe42   :  { %v923_v62 = vadd.f32 %v921_v60, %v913_v59  ;;  %v1262_v59 = vld [vmem:[%s2571_s5 + $0x18] sm:$0xff] }
 0xe43   :  { %v1920_v60 = vpack.c.bf16 %v1262_v59, %v1261_v56 }
 0xe44   :  { %1992 = vtanh.f32 %v923_v62 }
 0xe4e   :  { %v1993_v1 = vpop.eup %1992 }
 0xe4f   :  { %926 = vrot.lane.b32.xlu0 %v1993_v1, %s2087_s4 }
 0xec1   :  { %v927_v8 = vpop.permute.xlu0 %926 }
 0xec2   :  { %v2417_v13 = vmul.f32 %v1991_v55, %v927_v8  ;;  %v1260_v55 = vld [vmem:[%s2571_s5 + $0x8] sm:$0xff]  ;;  %v1265_v8 = vld [vmem:[%s2571_s5 + $0x30] sm:$0xff] }
 0xec4   :  { %937 = vrot.lane.b32.xlu1 %v2417_v13, %s2088_s22 }
 0xf36   :  { %v938_v63 = vpop.permute.xlu1 %937 }
 0xf37   :  { %1777 = vmatmul.mubr.msk.f32.vlgmr.msra.gmra.mrb[12].mxu0 %vm244_vm11, %v938_v63 }
 0xf38   :  { %1912 = vmatpush3.bf16.msra.mxu0 %v2243_v47  ;;  %1798 = vmatprep.mubr.msk.f32.mxu0 %vm2086_vm10, %v2084_v29 }
 0xf39   :  { %1913 = vmatprep.subr.bf16.mxu0 %v2085_v44 }
 0xf3c   :  { %1915 = vmatpush3.bf16.msra.mxu0 %v2253_v50 }
 0xf3d   :  { %1932 = vmatprep.subr.bf16.mxu0 %v2085_v44 }
0x100a   :  { %v1007_v0 = vpop.f32.mrb[12].mxu0 }
0x100b   :  { %v1008_v2 = vadd.f32 %v1007_v0, %v936_v10  ;;  %v1778_v4 = vpop.f32.mrb[13].mxu0 }
0x100d   :  { %1994 = vtanh.f32 %v1008_v2  ;;  %v1559_v47 = vmul.f32 -1.442695, %v1008_v2 }
0x100f   :  { %1996 = vpow2.f32 %v1559_v47 }
0x1017   :  { %v1995_v7 = vpop.eup %1994 }
0x1018   :  { %1020 = vrot.lane.b32.xlu0 %v1995_v7, %s2087_s4 }
0x1019   :  { %v1997_v11 = vpop.eup %1996 }
0x101a   :  { %v1014_v16 = vadd.f32 1.0, %v1997_v11 }
0x101c   :  { %1998 = vrcp.f32 %v1014_v16 }
0x1026   :  { %v1999_v50 = vpop.eup %1998 }
0x1027   :  { %v1018_v21 = vmul.f32 %v1999_v50, %v923_v62  ;;  %v1264_v62 = vld [vmem:[%s2571_s5 + $0x28] sm:$0xff] }
0x108a   :  { %v1021_v18 = vpop.permute.xlu0 %1020 }
0x108b   :  { %v1023_v20 = vmul.f32 %v1999_v50, %v1021_v18 }
0x108d   :  { %1025 = vrot.lane.b32.xlu1 %v1023_v20, %s2088_s22 }
0x10ff   :  { %v1026_v23 = vpop.permute.xlu1 %1025 }
0x1100   :  { %v1028_v9 = vadd.f32 %v1026_v23, %v1018_v21 }
0x1102   :  { %2000 = vtanh.f32 %v1028_v9 }
0x110c   :  { %v2001_v3 = vpop.eup %2000 }
0x110d   :  { %1031 = vrot.lane.b32.xlu0 %v2001_v3, %s2087_s4 }
0x117f   :  { %v1032_v6 = vpop.permute.xlu0 %1031 }
0x1180   :  { %v2436_v10 = vmul.f32 %v1999_v50, %v1032_v6 }
0x1182   :  { %1042 = vrot.lane.b32.xlu1 %v2436_v10, %s2088_s22 }
0x11f4   :  { %v1043_v24 = vpop.permute.xlu1 %1042 }
0x11f5   :  { %1788 = vmatmul.mubr.msk.f32.vlgmr.msra.gmra.mrb[14].mxu1 %vm244_vm11, %v1043_v24  ;;  %v1420_v24 = vld [vmem:[%s2573_s7 + $0x8] sm:$0xff] }
0x12c8   :  { %v1112_v26 = vpop.f32.mrb[14].mxu1 }
0x12c9   :  { %v1113_v27 = vadd.f32 %v1112_v26, %v1041_v22  ;;  %v1789_v28 = vpop.f32.mrb[15].mxu1 }
0x12ca   :  { %v1422_v28 = vld [vmem:[%s2573_s7 + $0x18] sm:$0xff] }
0x12cb   :  { %2002 = vtanh.f32 %v1113_v27  ;;  %v1561_v31 = vmul.f32 -1.442695, %v1113_v27  ;;  %v1421_v27 = vld [vmem:[%s2573_s7 + $0x10] sm:$0xff] }
0x12cd   :  { %2004 = vpow2.f32 %v1561_v31  ;;  %v1423_v31 = vld [vmem:[%s2573_s7 + $0x20] sm:$0xff] }
0x12d5   :  { %v2003_v30 = vpop.eup %2002 }
0x12d6   :  { %1125 = vrot.lane.b32.xlu0 %v2003_v30, %s2087_s4  ;;  %v1936_v30 = vpack.c.bf16 %v1422_v28, %v1421_v27 }
0x12d7   :  { %v2005_v32 = vpop.eup %2004 }
0x12d8   :  { %v1119_v33 = vadd.f32 1.0, %v2005_v32  ;;  %v1424_v32 = vld [vmem:[%s2573_s7 + $0x28] sm:$0xff] }
0x12da   :  { %2006 = vrcp.f32 %v1119_v33  ;;  %v1939_v33 = vpack.c.bf16 %v1424_v32, %v1423_v31 }
0x12e4   :  { %v2007_v34 = vpop.eup %2006 }
0x12e5   :  { %v1123_v37 = vmul.f32 %v2007_v34, %v1028_v9 }
0x1348   :  { %v1126_v35 = vpop.permute.xlu0 %1125 }
0x1349   :  { %v1128_v36 = vmul.f32 %v2007_v34, %v1126_v35  ;;  %v1426_v35 = vld [vmem:[%s2573_s7 + $0x38] sm:$0xff] }
0x134b   :  { %1130 = vrot.lane.b32.xlu1 %v1128_v36, %s2088_s22 }
0x13bd   :  { %v1131_v39 = vpop.permute.xlu1 %1130 }
0x13be   :  { %v1133_v40 = vadd.f32 %v1131_v39, %v1123_v37  ;;  %v1564_v37 = vld [vmem:[%s2572_s6] ss:$0 sm:$0xff]  ;;  %s2089_s6 = smov [#allocation6]  }
0x13c0   :  { %2008 = vtanh.f32 %v1133_v40 }
0x13ca   :  { %v2009_v61 = vpop.eup %2008 }
0x13cb   :  { %1136 = vrot.lane.b32.xlu0 %v2009_v61, %s2087_s4 }
0x143d   :  { %v1137_v17 = vpop.permute.xlu0 %1136 }
0x143e   :  { %v1139_v22 = vmul.f32 %v2007_v34, %v1137_v17  ;;  %v1425_v34 = vld [vmem:[%s2573_s7 + $0x30] sm:$0xff] }
0x143f   :  { %v1942_v36 = vpack.c.bf16 %v1426_v35, %v1425_v34 }
0x1440   :  { %1147 = vrot.lane.b32.xlu1 %v1139_v22, %s2088_s22 }
0x14b2   :  { %v1148_v41 = vpop.permute.xlu1 %1147 }
0x14b3   :  { %1799 = vmatmul.mubr.msk.f32.vlgmr.msra.gmra.mrb[14].mxu0 %vm244_vm11, %v1148_v41 }
0x14b4   :  { %1845 = vmatprep.mubr.msk.f32.mxu0 %vm2086_vm10, %v2084_v29 }
0x1586   :  { %v1217_v12 = vpop.f32.mrb[14].mxu0 }
0x1587   :  { %v1218_v42 = vadd.f32 %v1217_v12, %v1146_v19  ;;  %v1800_v45 = vpop.f32.mrb[15].mxu0 }
0x1589   :  { %2010 = vtanh.f32 %v1218_v42  ;;  %v1563_v48 = vmul.f32 -1.442695, %v1218_v42 }
0x158b   :  { %2012 = vpow2.f32 %v1563_v48 }
0x1593   :  { %v2011_v46 = vpop.eup %2010 }
0x1594   :  { %1230 = vrot.lane.b32.xlu0 %v2011_v46, %s2087_s4 }
0x1595   :  { %v2013_v49 = vpop.eup %2012 }
0x1596   :  { %v1224_v51 = vadd.f32 1.0, %v2013_v49 }
0x1598   :  { %2014 = vrcp.f32 %v1224_v51 }
0x15a2   :  { %v2015_v52 = vpop.eup %2014 }
0x15a3   :  { %v1228_v5 = vmul.f32 %v2015_v52, %v1133_v40 }
0x1606   :  { %v1231_v53 = vpop.permute.xlu0 %1230 }
0x1607   :  { %v1233_v29 = vmul.f32 %v2015_v52, %v1231_v53 }
0x1609   :  { %1235 = vrot.lane.b32.xlu1 %v1233_v29, %s2088_s22 }
0x160d   :  { %509 = vrot.lane.b32.xlu1 %v2347_v38, %s2087_s4 }
0x1611   :  { %721 = vrot.lane.b32.xlu1 %v2380_v25, %s2087_s4  ;;  %v1259_v25 = vld [vmem:[%s2571_s5] sm:$0xff] }
0x1612   :  { %v1916_v57 = vpack.c.bf16 %v1260_v55, %v1259_v25 }
0x1614   :  { %1917 = vmatprep.subr.bf16.mxu1 %v1916_v57 }
0x1615   :  { %1919 = vmatpush3.bf16.msra.mxu1 %v1916_v57 }
0x1616   :  { %1921 = vmatprep.subr.bf16.mxu1 %v1920_v60 }
0x1619   :  { %1923 = vmatpush3.bf16.msra.mxu1 %v1920_v60 }
0x167b   :  { %v1236_v14 = vpop.permute.xlu1 %1235 }
0x167c   :  { %v1238_v15 = vadd.f32 %v1236_v14, %v1228_v5 }
0x167e   :  { %2016 = vtanh.f32 %v1238_v15 }
0x167f   :  { %v510_v19 = vpop.permute.xlu1 %509 }
0x1680   :  { %513 = vst.msk [vmem:[#allocation2] sm:$0xff] %vm512_vm13, %v510_v19 }
0x1681   :  { %515 = vst.msk [vmem:[#allocation2 + $0x38] sm:$0xff] %vm514_vm14, %v510_v19 }
0x1683   :  { %v722_v54 = vpop.permute.xlu1 %721 }
0x1684   :  { %724 = vst.msk [vmem:[#allocation2 + $0x10] sm:$0xff] %vm512_vm13, %v722_v54 }
0x1685   :  { %725 = vst.msk [vmem:[#allocation2 + $0x28] sm:$0xff] %vm514_vm14, %v722_v54 }
0x1688   :  { %v2017_v38 = vpop.eup %2016 }
0x1689   :  { %1241 = vrot.lane.b32.xlu0 %v2017_v38, %s2087_s4 }
0x168d   :  { %616 = vrot.lane.b32.xlu0 %v2361_v58, %s2087_s4  ;;  %v1263_v58 = vld [vmem:[%s2571_s5 + $0x20] sm:$0xff] }
0x168e   :  { %v1924_v1 = vpack.c.bf16 %v1264_v62, %v1263_v58 }
0x1690   :  { %1925 = vmatprep.subr.bf16.mxu1 %v1924_v1 }
0x1691   :  { %1141 = vrot.lane.b32.xlu0 %v1139_v22, %s2087_s4  ;;  %1927 = vmatpush3.bf16.msra.mxu1 %v1924_v1  ;;  %v1573_v1 = vld [vmem:[#allocation3] ss:$0 sm:$0xff] }
0x1695   :  { %826 = vrot.lane.b32.xlu0 %v2399_v43, %s2087_s4  ;;  %v1266_v43 = vld [vmem:[%s2571_s5 + $0x38] sm:$0xff] }
0x1699   :  { %931 = vrot.lane.b32.xlu0 %v2417_v13, %s2087_s4  ;;  %v1928_v13 = vpack.c.bf16 %v1266_v43, %v1265_v8 }
0x169b   :  { %1929 = vmatprep.subr.bf16.mxu1 %v1928_v13 }
0x169c   :  { %1931 = vmatpush3.bf16.msra.mxu1 %v1928_v13 }
0x16fb   :  { %v1242_v63 = vpop.permute.xlu0 %1241 }
0x16fc   :  { %v1244_v0 = vmul.f32 %v2015_v52, %v1242_v63 }
0x16fe   :  { %1246 = vrot.lane.b32.xlu1 %v1244_v0, %s2087_s4 }
0x16ff   :  { %v617_v2 = vpop.permute.xlu0 %616 }
0x1700   :  { %619 = vst.msk [vmem:[#allocation2 + $0x8] sm:$0xff] %vm512_vm13, %v617_v2 }
0x1701   :  { %620 = vst.msk [vmem:[#allocation2 + $0x30] sm:$0xff] %vm514_vm14, %v617_v2 }
0x1702   :  { %1036 = vrot.lane.b32.xlu1 %v2436_v10, %s2087_s4  ;;  %v1419_v10 = vld [vmem:[%s2573_s7] sm:$0xff]  ;;  %s1514_s7 = sshll.u32 %s2089_s6, 4  ;;  %s1515_s7 = int_to_ptr.vmem [resolvable:$true] %s1514_s7 }
0x1703   :  { %v1142_v4 = vpop.permute.xlu0 %1141  ;;  %v1933_v26 = vpack.c.bf16 %v1420_v24, %v1419_v10  ;;  %s2056_s28 = scalar_lea.vmem %s1515_s7, 128  ;;  %p2061_p9 = scmp.lt.s32.totalorder %s1515_s7, %s1515_s7 }
0x1704   :  { %1144 = vst.msk [vmem:[#allocation2 + $0x30] sm:$0xff] %vm512_vm13, %v1142_v4  ;;  %p2057_p8 = scmp.ne.s32.totalorder %s1515_s7, %s2056_s28  ;;  %p2062_p10 = scmp.lt.s32.totalorder %s2056_s28, %s2056_s28 }
0x1705   :  { %1145 = vst.msk [vmem:[#allocation2 + $0x8] sm:$0xff] %vm514_vm14, %v1142_v4  ;;  %1934 = vmatpush3.bf16.msra.mxu0 %v1933_v26 }
0x1706   :  { %1935 = vmatprep.subr.bf16.mxu0 %v2085_v44  ;;  %p2063_p11 = por %p2062_p10, %p2061_p9 }
0x1707   :  { %v827_v7 = vpop.permute.xlu0 %826 }
0x1708   :  { %829 = vst.msk [vmem:[#allocation2 + $0x18] sm:$0xff] %vm512_vm13, %v827_v7  ;;  %p2064_p12 = pnand %p2063_p11, %p2057_p8 }
0x1709   :  { %830 = vst.msk [vmem:[#allocation2 + $0x20] sm:$0xff] %vm514_vm14, %v827_v7  ;;  %1937 = vmatpush3.bf16.msra.mxu0 %v1936_v30 }
0x170a   :  { %1938 = vmatprep.subr.bf16.mxu0 %v2085_v44 }
0x170b   :  { %v932_v47 = vpop.permute.xlu0 %931  ;;  %v1257_v3 = vld [vmem:[#allocation2 + $0x30] sm:$0xff] }
0x170c   :  { %934 = vst.msk [vmem:[#allocation2 + $0x20] sm:$0xff] %vm512_vm13, %v932_v47  ;;  %v1252_v18 = vld [vmem:[#allocation2 + $0x8] sm:$0xff] }
0x170d   :  { %935 = vst.msk [vmem:[#allocation2 + $0x18] sm:$0xff] %vm514_vm14, %v932_v47  ;;  %1940 = vmatpush3.bf16.msra.mxu0 %v1939_v33 }
0x170e   :  { %1941 = vmatprep.subr.bf16.mxu0 %v2085_v44 }
0x1711   :  { %1943 = vmatpush3.bf16.msra.mxu0 %v1942_v36 }
0x1713   :  { %v1255_v23 = vld [vmem:[#allocation2 + $0x20] sm:$0xff] }
0x1714   :  { %v1254_v21 = vld [vmem:[#allocation2 + $0x18] sm:$0xff] }
0x1770   :  { %v1247_v11 = vpop.permute.xlu1 %1246 }
0x1771   :  { %1249 = vst.msk [vmem:[#allocation2 + $0x38] sm:$0xff] %vm512_vm13, %v1247_v11 }
0x1772   :  { %1250 = vst.msk [vmem:[#allocation2] sm:$0xff] %vm514_vm14, %v1247_v11 }
0x1774   :  { %v1037_v16 = vpop.permute.xlu1 %1036 }
0x1775   :  { %1039 = vst.msk [vmem:[#allocation2 + $0x28] sm:$0xff] %vm512_vm13, %v1037_v16 }
0x1776   :  { %1040 = vst.msk [vmem:[#allocation2 + $0x10] sm:$0xff] %vm514_vm14, %v1037_v16 }
0x1778   :  { %v1258_v6 = vld [vmem:[#allocation2 + $0x38] sm:$0xff] }
0x1779   :  { %v1251_v50 = vld [vmem:[#allocation2] sm:$0xff] }
0x177a   :  { %1817 = vmatprep.mubr.msk.f32.mxu1 %vm1274_vm15, %v1251_v50 }
0x177b   :  { %1818 = vmatmul.mubr.msk.f32.vlgmr.msra.gmra.mrb[16].mxu1 %vm1274_vm15, %v1252_v18 }
0x177c   :  { %v1256_v9 = vld [vmem:[#allocation2 + $0x28] sm:$0xff] }
0x177d   :  { %v1253_v20 = vld [vmem:[#allocation2 + $0x10] sm:$0xff] }
0x177e   :  { %1820 = vmatprep.mubr.msk.f32.mxu1 %vm1274_vm15, %v1253_v20 }
0x177f   :  { %1821 = vmatmul.mubr.msk.f32.gmra.mrb[18].mxu1 %vm1274_vm15, %v1254_v21 }
0x1780   :  { %1823 = vmatprep.mubr.msk.f32.mxu1 %vm1274_vm15, %v1255_v23 }
0x1783   :  { %1824 = vmatmul.mubr.msk.f32.gmra.mrb[20].mxu1 %vm1274_vm15, %v1256_v9 }
0x1784   :  { %1826 = vmatprep.mubr.msk.f32.mxu1 %vm1274_vm15, %v1257_v3 }
0x1787   :  { %1827 = vmatmul.mubr.msk.f32.gmra.mrb[22].mxu1 %vm1274_vm15, %v1258_v6 }
0x184e   :  { %v1819_v39 = vpop.f32.mrb[16].mxu1 }
0x184f   :  { %v1371_v40 = vadd.f32 %v1819_v39, %v1564_v37  ;;  %v1365_v61 = vpop.f32.mrb[17].mxu1 }
0x1850   :  { %v1366_v17 = vadd.f32 %v1564_v37, %v1365_v61 }
0x1851   :  { %2018 = vtanh.f32 %v1371_v40 }
0x1852   :  { %2020 = vtanh.f32 %v1366_v17  ;;  %v1822_v44 = vpop.f32.mrb[18].mxu1 }
0x1853   :  { %v1375_v22 = vpop.f32.mrb[19].mxu1  ;;  %v1381_v41 = vadd.f32 %v1822_v44, %v1564_v37 }
0x1854   :  { %v1376_v12 = vadd.f32 %v1564_v37, %v1375_v22 }
0x1856   :  { %2022 = vtanh.f32 %v1376_v12  ;;  %v1825_v42 = vpop.f32.mrb[20].mxu1 }
0x1857   :  { %v1385_v45 = vpop.f32.mrb[21].mxu1  ;;  %2024 = vtanh.f32 %v1381_v41  ;;  %v1391_v46 = vadd.f32 %v1825_v42, %v1564_v37 }
0x1858   :  { %v1386_v48 = vadd.f32 %v1564_v37, %v1385_v45 }
0x185a   :  { %2026 = vtanh.f32 %v1386_v48  ;;  %v1828_v49 = vpop.f32.mrb[22].mxu1 }
0x185b   :  { %v2019_v51 = vpop.eup %2018  ;;  %v1395_v52 = vpop.f32.mrb[23].mxu1  ;;  %2028 = vtanh.f32 %v1391_v46  ;;  %v1401_v29 = vadd.f32 %v1828_v49, %v1564_v37 }
0x185c   :  { %v2021_v53 = vpop.eup %2020  ;;  %v1396_v5 = vadd.f32 %v1564_v37, %v1395_v52 }
0x185d   :  { %v1412_v14 = vmax.f32 %v2021_v53, %v2019_v51 }
0x185e   :  { %2030 = vtanh.f32 %v1396_v5 }
0x185f   :  { %2032 = vtanh.f32 %v1401_v29 }
0x1860   :  { %v2023_v15 = vpop.eup %2022 }
0x1861   :  { %v1413_v19 = vmax.f32 %v1412_v14, %v2023_v15  ;;  %v2025_v54 = vpop.eup %2024 }
0x1863   :  { %v1414_v38 = vmax.f32 %v1413_v19, %v2025_v54 }
0x1864   :  { %v2027_v25 = vpop.eup %2026 }
0x1865   :  { %v1415_v55 = vmax.f32 %v1414_v38, %v2027_v25  ;;  %v2029_v56 = vpop.eup %2028 }
0x1867   :  { %v1416_v57 = vmax.f32 %v1415_v55, %v2029_v56 }
0x1868   :  { %v2031_v59 = vpop.eup %2030 }
0x1869   :  { %v1417_v60 = vmax.f32 %v1416_v57, %v2031_v59  ;;  %v2033_v58 = vpop.eup %2032 }
0x186b   :  { %v1418_v62 = vmax.f32 %v1417_v60, %v2033_v58 }
0x186d   :  { %1846 = vmatmul.mubr.msk.f32.vlgmr.msra.gmra.mrb[16].mxu0 %vm1274_vm15, %v1418_v62 }
0x1940   :  { %v1503_v8 = vpop.f32.mrb[16].mxu0 }
0x1941   :  { %v1504_v43 = vadd.f32 %v1573_v1, %v1503_v8  ;;  %v1847_v13 = vpop.f32.mrb[17].mxu0 }
0x1943   :  { %1507 = vst [vmem:[#allocation6] sm:$0xff] %v1504_v43 }
0x1944   :  { %2067 = shalt.err (!%p2064_p12)
}
0x1945   :  { %s2068_s10 = scalar_lea.hbm %s2575_s9, 128 }
0x1946   :  { %p2069_p13 = scmp.ne.s32.totalorder %s2575_s9, %s2068_s10  ;;  %p2072_p0 = scmp.lt.u32.totalorder %s2068_s10, %s2575_s9 }
0x1948   :  { %p2074_p1 = pnand %p2072_p0, %p2069_p13 }
0x194a   :  { %2077 = shalt.err (!%p2074_p1)
}
0x194b   :  { %1517 = dma.vmem_to_hbm [thread:$0]  %s1515_s7, 128, %s2575_s9, [#allocation5]  }
0x194c   :  { %2080 = dma.done.wait [#allocation5], 128  }
0x194d   :  { %2081 = vsyncadd [#allocation5], 4294967168 }
0x194e   :  { %1521 = vsyncpa [#allocation4], 1 }
0x194f   :  { %1522 = vsyncpa [#allocation5], 1 }

</bundles_post_ra>
